<compile_context>
chip_gen: v7x
topology: tpu7x:2x2x1
jax: 0.10.0
libtpu: 0.0.40
codegen_flags: <defaults>
</compile_context>

<pallas_src>
from functools import partial

import jax
import jax.numpy as jnp
from jax.experimental import pallas as pl
from jax.experimental.pallas import tpu as pltpu


def _attn_block_kernel(x_ref, wqkv_ref, wo_ref, bias_ref, o_ref, ctx_scratch,
                       *, num_heads, head_dim, eps, softmax_dtype):
    Bt, S, E = x_ref.shape
    x2 = x_ref[...].reshape(Bt * S, E)                         # (Bt*S, E) f32

    # --- LayerNorm stats in f32 (gamma + q-scale already folded into wqkv) ---
    mean = jnp.mean(x2, axis=-1, keepdims=True)
    xc = x2 - mean
    var = jnp.mean(xc * xc, axis=-1, keepdims=True)
    xn = xc * jax.lax.rsqrt(var + eps)

    # --- fused QKV projection: one MXU pass, bf16 operands, f32 accumulate ---
    qkv = jnp.dot(xn.astype(jnp.bfloat16), wqkv_ref[...],
                  preferred_element_type=jnp.float32)          # (Bt*S, 3E)
    qkv = qkv.reshape(Bt, S, 3 * E)

    bias = bias_ref[...]                                       # (S, S) f32, resident

    for h in range(num_heads):        # static unroll; all slices 128-lane aligned
        lo = h * head_dim
        qh = qkv[:, :, lo:lo + head_dim].astype(jnp.bfloat16)           # pre-scaled
        kh = qkv[:, :, E + lo:E + lo + head_dim].astype(jnp.bfloat16)
        vh = qkv[:, :, 2 * E + lo:2 * E + lo + head_dim].astype(jnp.bfloat16)

        # q k^T without an explicit transpose: contract last dim vs last dim.
        s = jax.lax.dot_general(
            qh, kh, dimension_numbers=(((2,), (2,)), ((0,), (0,))),
            preferred_element_type=jnp.float32) + bias[None]            # (Bt, S, S)
        m = jnp.max(s, axis=-1, keepdims=True)                          # finite (diag)
        p = jnp.exp((s - m).astype(softmax_dtype))                      # un-normalized
        denom = jnp.sum(p, axis=-1, dtype=jnp.float32, keepdims=True)
        ctx = jax.lax.dot_general(
            p.astype(jnp.bfloat16), vh,
            dimension_numbers=(((2,), (1,)), ((0,), (0,))),
            preferred_element_type=jnp.float32)                         # (Bt, S, Dh)
        ctx = ctx * pl.reciprocal(denom, approx=True)    # deferred softmax norm
        ctx_scratch[:, :, lo:lo + head_dim] = ctx.astype(jnp.bfloat16)

    # --- fused output projection + residual ---
    out = jnp.dot(ctx_scratch[...].reshape(Bt * S, E), wo_ref[...],
                  preferred_element_type=jnp.float32)          # (Bt*S, E)
    o_ref[...] = (out + x2).reshape(Bt, S, E).astype(o_ref.dtype)


def _pick_batch_block(batch, seq):
    """How many batch elements to stack per grid step (fill the MXU M dim)."""
    if seq % 8 != 0:          # keep in-kernel reshapes on sublane-tile boundaries
        return 1
    bb = min(batch, max(1, 256 // seq))
    while batch % bb != 0:
        bb -= 1
    return max(bb, 1)


def _vmem_limit_bytes(bt, seq, emb):
    """Working-set estimate (+50% headroom), clamped for v7x's 64 MiB VMEM/TC."""
    f32, bf16 = 4, 2
    io = 2 * 2 * bt * seq * emb * f32              # x + out blocks, double-buffered
    weights = 2 * (3 * emb * emb + emb * emb) * bf16
    bias = 2 * seq * seq * f32
    scratch = bt * seq * emb * bf16
    temps = (bt * seq * 3 * emb * f32              # f32 qkv
             + 3 * bt * seq * seq * f32            # live score/prob temps (unrolled heads)
             + 3 * bt * seq * emb * f32)           # xn / out temps
    total = io + weights + bias + scratch + temps
    return int(min(max(total * 3 // 2, 8 * 1024 * 1024), 64 * 1024 * 1024))


def attention_block(x, gamma, wqkv_t, wo_t, scaler, *, num_heads, lr_mult=100.0,
                    softmax_dtype=jnp.bfloat16, batch_block=None):
    """x: (B,S,E) f32. wqkv_t: (E,3E) = [Wq.T | Wk.T | Wv.T]. wo_t: (E,E) = Wo.T.

    softmax_dtype=jnp.bfloat16 uses v6e/v7x's bf16 EUP and skips a cast pass;
    pass jnp.float32 on v5e (no bf16 VPU/EUP), which restores the old f32 path.
    """
    B, S, E = x.shape
    head_dim = E // num_heads
    assert num_heads * head_dim == E, (
        "num_heads must tile the embedding exactly (ctx-scratch correctness)")

    # Fold LayerNorm gamma and the 1/sqrt(head_dim) query scale into the fused
    # QKV weight host-side; keep weights bf16 in HBM (halves weight DMA bytes).
    scale = 1.0 / (head_dim ** 0.5)
    col_scale = jnp.concatenate(
        [jnp.full((E,), scale, jnp.float32), jnp.ones((2 * E,), jnp.float32)])
    wqkv_b = (gamma[:, None] * wqkv_t * col_scale[None, :]).astype(jnp.bfloat16)
    wo_b = wo_t.astype(jnp.bfloat16)                           # (E, E)

    # Causal linear-encoding bias, built once host-side; a constant index_map
    # keeps it VMEM-resident across the whole grid (no per-step mask VPU work).
    alpha = jax.nn.softplus(lr_mult * scaler).astype(jnp.float32)
    i = jnp.arange(S)[:, None]
    j = jnp.arange(S)[None, :]
    bias = jnp.where(j <= i, alpha * (j - i).astype(jnp.float32), -jnp.inf)

    bt = batch_block if batch_block is not None else _pick_batch_block(B, S)
    assert B % bt == 0, "batch_block must divide batch"

    kernel = partial(_attn_block_kernel, num_heads=num_heads, head_dim=head_dim,
                     eps=1e-5, softmax_dtype=softmax_dtype)
    return pl.pallas_call(
        kernel,
        out_shape=jax.ShapeDtypeStruct((B, S, E), jnp.float32),
        grid=(B // bt,),
        in_specs=[
            pl.BlockSpec((bt, S, E), lambda b: (b, 0, 0)),       # x
            pl.BlockSpec((E, 3 * E), lambda b: (0, 0)),          # fused QKV weight
            pl.BlockSpec((E, E), lambda b: (0, 0)),              # out-proj weight
            pl.BlockSpec((S, S), lambda b: (0, 0)),              # causal bias (resident)
        ],
        out_specs=pl.BlockSpec((bt, S, E), lambda b: (b, 0, 0)),
        scratch_shapes=[pltpu.VMEM((bt, S, E), jnp.bfloat16)],   # concat-free heads
        compiler_params=pltpu.CompilerParams(
            dimension_semantics=("parallel",),
            vmem_limit_bytes=_vmem_limit_bytes(bt, S, E)),
    )(x, wqkv_b, wo_b, bias)


def reference_forward(x, gamma, wqkv_t, wo_t, scaler, num_heads, lr_mult=100.0):
    """Pure-JAX reference with the same bf16-operand / f32-accumulate precision."""
    B, S, E = x.shape
    Dh = E // num_heads
    bf16 = jnp.bfloat16

    mean = jnp.mean(x, axis=-1, keepdims=True)
    xc = x - mean
    var = jnp.mean(xc * xc, axis=-1, keepdims=True)
    xn = xc * jax.lax.rsqrt(var + 1e-5) * gamma[None, None, :]

    qkv = jnp.einsum("bse,ef->bsf", xn.astype(bf16), wqkv_t.astype(bf16),
                     preferred_element_type=jnp.float32)
    q, k, v = qkv[..., :E], qkv[..., E:2 * E], qkv[..., 2 * E:]
    qh = q.reshape(B, S, num_heads, Dh).transpose(0, 2, 1, 3)
    kh = k.reshape(B, S, num_heads, Dh).transpose(0, 2, 1, 3)
    vh = v.reshape(B, S, num_heads, Dh).transpose(0, 2, 1, 3)

    alpha = jax.nn.softplus(lr_mult * scaler)
    i = jnp.arange(S)[:, None]
    j = jnp.arange(S)[None, :]
    bias = jnp.where(j <= i, alpha * (j - i).astype(jnp.float32), -jnp.inf)

    s = jnp.einsum("bhqd,bhkd->bhqk", (qh / (Dh ** 0.5)).astype(bf16),
                   kh.astype(bf16), preferred_element_type=jnp.float32) + bias
    p = jax.nn.softmax(s, axis=-1)
    ctx = jnp.einsum("bhqk,bhkd->bhqd", p.astype(bf16), vh.astype(bf16),
                     preferred_element_type=jnp.float32)
    ctx = ctx.transpose(0, 2, 1, 3).reshape(B, S, E)
    out = jnp.einsum("bse,ef->bsf", ctx.astype(bf16), wo_t.astype(bf16),
                     preferred_element_type=jnp.float32)
    return out + x


if __name__ == "__main__":
    # Small demo shapes consistent with the module: num_heads=3 (hyp),
    # E = residual_depth = 384 -> head_dim = 128 (lane-dense), short sequence.
    B, S, H = 2, 16, 3
    E = 384

    key = jax.random.PRNGKey(0)
    kx, kqkv, ko, kg = jax.random.split(key, 4)

    x = jax.random.normal(kx, (B, S, E), dtype=jnp.float32)

    # nn.MultiheadAttention(bias=False): in_proj_weight (3E, E), out_proj (E, E)
    in_proj_weight = 0.02 * jax.random.normal(kqkv, (3 * E, E), dtype=jnp.float32)
    out_proj_weight = 0.02 * jax.random.normal(ko, (E, E), dtype=jnp.float32)
    wqkv_t = in_proj_weight.T            # (E, 3E) = [Wq.T | Wk.T | Wv.T]
    wo_t = out_proj_weight.T             # (E, E)  = Wo.T

    # LayerNorm weight (module inits to ones; perturbed here to exercise the
    # gamma-into-weights fold), bias disabled in the module.
    gamma = 1.0 + 0.05 * jax.random.normal(kg, (E,), dtype=jnp.float32)

    # linear_encoding_scaler init = 1 / linear_encoding_lr_mult
    scaler = jnp.float32(1.0 / 100.0)

    out = attention_block(x, gamma, wqkv_t, wo_t, scaler, num_heads=H)
    out = jax.block_until_ready(out)

    ref = reference_forward(x, gamma, wqkv_t, wo_t, scaler, H)
    assert out.shape == (B, S, E)
    max_diff = jnp.max(jnp.abs(out - ref))
    assert jnp.allclose(out, ref, atol=2e-2, rtol=2e-2), (
        f"max abs diff {max_diff}")

    print("KERNEL_OK")
</pallas_src>

<mosaic_0001>
module attributes {stable_mosaic.version = 11 : i64} {
  func.func @_attn_block_kernel(%arg0: i32, %arg1: memref<2x16x384xf32, #tpu.memory_space<vmem>>, %arg2: memref<384x1152xbf16, #tpu.memory_space<vmem>>, %arg3: memref<384x384xbf16, #tpu.memory_space<vmem>>, %arg4: memref<16x16xf32, #tpu.memory_space<vmem>>, %arg5: memref<2x16x384xf32, #tpu.memory_space<vmem>>, %arg6: memref<2x16x384xbf16, #tpu.memory_space<vmem>>) attributes {dimension_semantics = [#tpu.dimension_semantics<parallel>], iteration_bounds = array<i64: 1>, scalar_prefetch = 0 : i64, scratch_operands = 1 : i64, tpu.core_type = #tpu.core_type<tc>, window_params = [{transform_indices = @transform_0, window_bounds = array<i64: 2, 16, 384>}, {pipeline_mode = #tpu.pipeline_mode<synchronous>, transform_indices = @transform_1, window_bounds = array<i64: 384, 1152>}, {pipeline_mode = #tpu.pipeline_mode<synchronous>, transform_indices = @transform_2, window_bounds = array<i64: 384, 384>}, {pipeline_mode = #tpu.pipeline_mode<synchronous>, transform_indices = @transform_3, window_bounds = array<i64: 16, 16>}, {transform_indices = @transform_4, window_bounds = array<i64: 2, 16, 384>}]} {
    %c0 = arith.constant 0 : index
    %c0_0 = arith.constant 0 : index
    %c0_1 = arith.constant 0 : index
    %0 = vector.load %arg1[%c0, %c0_0, %c0_1] : memref<2x16x384xf32, #tpu.memory_space<vmem>>, vector<2x16x384xf32>
    %1 = vector.shape_cast %0 : vector<2x16x384xf32> to vector<32x384xf32>
    %cst = arith.constant dense<0.000000e+00> : vector<32xf32>
    %2 = vector.multi_reduction <add>, %1, %cst [1] : vector<32x384xf32> to vector<32xf32>
    %3 = vector.shape_cast %2 : vector<32xf32> to vector<32x1xf32>
    %cst_2 = arith.constant 3.840000e+02 : f32
    %4 = vector.broadcast %cst_2 : f32 to vector<32x1xf32>
    %5 = arith.divf %3, %4 : vector<32x1xf32>
    %6 = vector.broadcast %5 : vector<32x1xf32> to vector<32x384xf32>
    %7 = arith.subf %1, %6 : vector<32x384xf32>
    %8 = arith.mulf %7, %7 : vector<32x384xf32>
    %cst_3 = arith.constant dense<0.000000e+00> : vector<32xf32>
    %9 = vector.multi_reduction <add>, %8, %cst_3 [1] : vector<32x384xf32> to vector<32xf32>
    %10 = vector.shape_cast %9 : vector<32xf32> to vector<32x1xf32>
    %cst_4 = arith.constant 3.840000e+02 : f32
    %11 = vector.broadcast %cst_4 : f32 to vector<32x1xf32>
    %12 = arith.divf %10, %11 : vector<32x1xf32>
    %cst_5 = arith.constant 9.99999974E-6 : f32
    %13 = vector.broadcast %cst_5 : f32 to vector<32x1xf32>
    %14 = arith.addf %12, %13 : vector<32x1xf32>
    %15 = math.rsqrt %14 : vector<32x1xf32>
    %16 = vector.broadcast %15 : vector<32x1xf32> to vector<32x384xf32>
    %17 = arith.mulf %7, %16 : vector<32x384xf32>
    %18 = arith.truncf %17 : vector<32x384xf32> to vector<32x384xbf16>
    %c0_6 = arith.constant 0 : index
    %c0_7 = arith.constant 0 : index
    %19 = vector.load %arg2[%c0_6, %c0_7] : memref<384x1152xbf16, #tpu.memory_space<vmem>>, vector<384x1152xbf16>
    %cst_8 = arith.constant dense<0.000000e+00> : vector<32x1152xf32>
    %20 = tpu.matmul %18, %19, %cst_8 {dimension_numbers = #tpu.dot_dimension_numbers<[1], [0], [0], [1], [0, 0, 1, 1], [], []>} : vector<32x384xbf16>, vector<384x1152xbf16>, vector<32x1152xf32> -> vector<32x1152xf32>
    %21 = vector.shape_cast %20 : vector<32x1152xf32> to vector<2x16x1152xf32>
    %c0_9 = arith.constant 0 : index
    %c0_10 = arith.constant 0 : index
    %22 = vector.load %arg4[%c0_9, %c0_10] : memref<16x16xf32, #tpu.memory_space<vmem>>, vector<16x16xf32>
    %23 = vector.extract_strided_slice %21 {offsets = [0, 0, 0], sizes = [2, 16, 128], strides = [1, 1, 1]} : vector<2x16x1152xf32> to vector<2x16x128xf32>
    %24 = arith.truncf %23 : vector<2x16x128xf32> to vector<2x16x128xbf16>
    %25 = vector.extract_strided_slice %21 {offsets = [0, 0, 384], sizes = [2, 16, 128], strides = [1, 1, 1]} : vector<2x16x1152xf32> to vector<2x16x128xf32>
    %26 = arith.truncf %25 : vector<2x16x128xf32> to vector<2x16x128xbf16>
    %27 = vector.extract_strided_slice %21 {offsets = [0, 0, 768], sizes = [2, 16, 128], strides = [1, 1, 1]} : vector<2x16x1152xf32> to vector<2x16x128xf32>
    %28 = arith.truncf %27 : vector<2x16x128xf32> to vector<2x16x128xbf16>
    %cst_11 = arith.constant dense<0.000000e+00> : vector<2x16x16xf32>
    %29 = tpu.matmul %24, %26, %cst_11 {dimension_numbers = #tpu.dot_dimension_numbers<[2], [2], [1], [1], [0, 0, 0, 1, 1, 1], [0], [0]>} : vector<2x16x128xbf16>, vector<2x16x128xbf16>, vector<2x16x16xf32> -> vector<2x16x16xf32>
    %30 = vector.shape_cast %22 : vector<16x16xf32> to vector<1x16x16xf32>
    %31 = vector.broadcast %30 : vector<1x16x16xf32> to vector<2x16x16xf32>
    %32 = arith.addf %29, %31 : vector<2x16x16xf32>
    %cst_12 = arith.constant dense<0xFF800000> : vector<2x16xf32>
    %33 = vector.multi_reduction <maximumf>, %32, %cst_12 [2] : vector<2x16x16xf32> to vector<2x16xf32>
    %34 = vector.shape_cast %33 : vector<2x16xf32> to vector<2x16x1xf32>
    %35 = vector.broadcast %34 : vector<2x16x1xf32> to vector<2x16x16xf32>
    %36 = arith.subf %32, %35 : vector<2x16x16xf32>
    %37 = arith.truncf %36 : vector<2x16x16xf32> to vector<2x16x16xbf16>
    %38 = math.exp %37 : vector<2x16x16xbf16>
    %39 = arith.extf %38 : vector<2x16x16xbf16> to vector<2x16x16xf32>
    %cst_13 = arith.constant dense<0.000000e+00> : vector<2x16xf32>
    %40 = vector.multi_reduction <add>, %39, %cst_13 [2] : vector<2x16x16xf32> to vector<2x16xf32>
    %41 = vector.shape_cast %40 : vector<2x16xf32> to vector<2x16x1xf32>
    %cst_14 = arith.constant dense<0.000000e+00> : vector<2x16x128xf32>
    %42 = tpu.matmul %38, %28, %cst_14 {dimension_numbers = #tpu.dot_dimension_numbers<[2], [1], [1], [2], [0, 0, 0, 1, 1, 2], [0], [0]>} : vector<2x16x16xbf16>, vector<2x16x128xbf16>, vector<2x16x128xf32> -> vector<2x16x128xf32>
    %43 = tpu.reciprocal %41 {approx = true} : vector<2x16x1xf32> -> vector<2x16x1xf32>
    %44 = vector.broadcast %43 : vector<2x16x1xf32> to vector<2x16x128xf32>
    %45 = arith.mulf %42, %44 : vector<2x16x128xf32>
    %46 = arith.truncf %45 : vector<2x16x128xf32> to vector<2x16x128xbf16>
    %c0_15 = arith.constant 0 : index
    %c0_16 = arith.constant 0 : index
    %c0_17 = arith.constant 0 : index
    %47 = vector.load %arg6[%c0_15, %c0_16, %c0_17] : memref<2x16x384xbf16, #tpu.memory_space<vmem>>, vector<2x16x128xbf16>
    tpu.vector_store %arg6[%c0_15, %c0_16, %c0_17], %46 {strides = array<i32>} : memref<2x16x384xbf16, #tpu.memory_space<vmem>>, vector<2x16x128xbf16>,
    %48 = vector.extract_strided_slice %21 {offsets = [0, 0, 128], sizes = [2, 16, 128], strides = [1, 1, 1]} : vector<2x16x1152xf32> to vector<2x16x128xf32>
    %49 = arith.truncf %48 : vector<2x16x128xf32> to vector<2x16x128xbf16>
    %50 = vector.extract_strided_slice %21 {offsets = [0, 0, 512], sizes = [2, 16, 128], strides = [1, 1, 1]} : vector<2x16x1152xf32> to vector<2x16x128xf32>
    %51 = arith.truncf %50 : vector<2x16x128xf32> to vector<2x16x128xbf16>
    %52 = vector.extract_strided_slice %21 {offsets = [0, 0, 896], sizes = [2, 16, 128], strides = [1, 1, 1]} : vector<2x16x1152xf32> to vector<2x16x128xf32>
    %53 = arith.truncf %52 : vector<2x16x128xf32> to vector<2x16x128xbf16>
    %cst_18 = arith.constant dense<0.000000e+00> : vector<2x16x16xf32>
    %54 = tpu.matmul %49, %51, %cst_18 {dimension_numbers = #tpu.dot_dimension_numbers<[2], [2], [1], [1], [0, 0, 0, 1, 1, 1], [0], [0]>} : vector<2x16x128xbf16>, vector<2x16x128xbf16>, vector<2x16x16xf32> -> vector<2x16x16xf32>
    %55 = vector.shape_cast %22 : vector<16x16xf32> to vector<1x16x16xf32>
    %56 = vector.broadcast %55 : vector<1x16x16xf32> to vector<2x16x16xf32>
    %57 = arith.addf %54, %56 : vector<2x16x16xf32>
    %cst_19 = arith.constant dense<0xFF800000> : vector<2x16xf32>
    %58 = vector.multi_reduction <maximumf>, %57, %cst_19 [2] : vector<2x16x16xf32> to vector<2x16xf32>
    %59 = vector.shape_cast %58 : vector<2x16xf32> to vector<2x16x1xf32>
    %60 = vector.broadcast %59 : vector<2x16x1xf32> to vector<2x16x16xf32>
    %61 = arith.subf %57, %60 : vector<2x16x16xf32>
    %62 = arith.truncf %61 : vector<2x16x16xf32> to vector<2x16x16xbf16>
    %63 = math.exp %62 : vector<2x16x16xbf16>
    %64 = arith.extf %63 : vector<2x16x16xbf16> to vector<2x16x16xf32>
    %cst_20 = arith.constant dense<0.000000e+00> : vector<2x16xf32>
    %65 = vector.multi_reduction <add>, %64, %cst_20 [2] : vector<2x16x16xf32> to vector<2x16xf32>
    %66 = vector.shape_cast %65 : vector<2x16xf32> to vector<2x16x1xf32>
    %cst_21 = arith.constant dense<0.000000e+00> : vector<2x16x128xf32>
    %67 = tpu.matmul %63, %53, %cst_21 {dimension_numbers = #tpu.dot_dimension_numbers<[2], [1], [1], [2], [0, 0, 0, 1, 1, 2], [0], [0]>} : vector<2x16x16xbf16>, vector<2x16x128xbf16>, vector<2x16x128xf32> -> vector<2x16x128xf32>
    %68 = tpu.reciprocal %66 {approx = true} : vector<2x16x1xf32> -> vector<2x16x1xf32>
    %69 = vector.broadcast %68 : vector<2x16x1xf32> to vector<2x16x128xf32>
    %70 = arith.mulf %67, %69 : vector<2x16x128xf32>
    %71 = arith.truncf %70 : vector<2x16x128xf32> to vector<2x16x128xbf16>
    %c0_22 = arith.constant 0 : index
    %c0_23 = arith.constant 0 : index
    %c128 = arith.constant 128 : index
    %72 = vector.load %arg6[%c0_22, %c0_23, %c128] : memref<2x16x384xbf16, #tpu.memory_space<vmem>>, vector<2x16x128xbf16>
    tpu.vector_store %arg6[%c0_22, %c0_23, %c128], %71 {strides = array<i32>} : memref<2x16x384xbf16, #tpu.memory_space<vmem>>, vector<2x16x128xbf16>,
    %73 = vector.extract_strided_slice %21 {offsets = [0, 0, 256], sizes = [2, 16, 128], strides = [1, 1, 1]} : vector<2x16x1152xf32> to vector<2x16x128xf32>
    %74 = arith.truncf %73 : vector<2x16x128xf32> to vector<2x16x128xbf16>
    %75 = vector.extract_strided_slice %21 {offsets = [0, 0, 640], sizes = [2, 16, 128], strides = [1, 1, 1]} : vector<2x16x1152xf32> to vector<2x16x128xf32>
    %76 = arith.truncf %75 : vector<2x16x128xf32> to vector<2x16x128xbf16>
    %77 = vector.extract_strided_slice %21 {offsets = [0, 0, 1024], sizes = [2, 16, 128], strides = [1, 1, 1]} : vector<2x16x1152xf32> to vector<2x16x128xf32>
    %78 = arith.truncf %77 : vector<2x16x128xf32> to vector<2x16x128xbf16>
    %cst_24 = arith.constant dense<0.000000e+00> : vector<2x16x16xf32>
    %79 = tpu.matmul %74, %76, %cst_24 {dimension_numbers = #tpu.dot_dimension_numbers<[2], [2], [1], [1], [0, 0, 0, 1, 1, 1], [0], [0]>} : vector<2x16x128xbf16>, vector<2x16x128xbf16>, vector<2x16x16xf32> -> vector<2x16x16xf32>
    %80 = vector.shape_cast %22 : vector<16x16xf32> to vector<1x16x16xf32>
    %81 = vector.broadcast %80 : vector<1x16x16xf32> to vector<2x16x16xf32>
    %82 = arith.addf %79, %81 : vector<2x16x16xf32>
    %cst_25 = arith.constant dense<0xFF800000> : vector<2x16xf32>
    %83 = vector.multi_reduction <maximumf>, %82, %cst_25 [2] : vector<2x16x16xf32> to vector<2x16xf32>
    %84 = vector.shape_cast %83 : vector<2x16xf32> to vector<2x16x1xf32>
    %85 = vector.broadcast %84 : vector<2x16x1xf32> to vector<2x16x16xf32>
    %86 = arith.subf %82, %85 : vector<2x16x16xf32>
    %87 = arith.truncf %86 : vector<2x16x16xf32> to vector<2x16x16xbf16>
    %88 = math.exp %87 : vector<2x16x16xbf16>
    %89 = arith.extf %88 : vector<2x16x16xbf16> to vector<2x16x16xf32>
    %cst_26 = arith.constant dense<0.000000e+00> : vector<2x16xf32>
    %90 = vector.multi_reduction <add>, %89, %cst_26 [2] : vector<2x16x16xf32> to vector<2x16xf32>
    %91 = vector.shape_cast %90 : vector<2x16xf32> to vector<2x16x1xf32>
    %cst_27 = arith.constant dense<0.000000e+00> : vector<2x16x128xf32>
    %92 = tpu.matmul %88, %78, %cst_27 {dimension_numbers = #tpu.dot_dimension_numbers<[2], [1], [1], [2], [0, 0, 0, 1, 1, 2], [0], [0]>} : vector<2x16x16xbf16>, vector<2x16x128xbf16>, vector<2x16x128xf32> -> vector<2x16x128xf32>
    %93 = tpu.reciprocal %91 {approx = true} : vector<2x16x1xf32> -> vector<2x16x1xf32>
    %94 = vector.broadcast %93 : vector<2x16x1xf32> to vector<2x16x128xf32>
    %95 = arith.mulf %92, %94 : vector<2x16x128xf32>
    %96 = arith.truncf %95 : vector<2x16x128xf32> to vector<2x16x128xbf16>
    %c0_28 = arith.constant 0 : index
    %c0_29 = arith.constant 0 : index
    %c256 = arith.constant 256 : index
    %97 = vector.load %arg6[%c0_28, %c0_29, %c256] : memref<2x16x384xbf16, #tpu.memory_space<vmem>>, vector<2x16x128xbf16>
    tpu.vector_store %arg6[%c0_28, %c0_29, %c256], %96 {strides = array<i32>} : memref<2x16x384xbf16, #tpu.memory_space<vmem>>, vector<2x16x128xbf16>,
    %c0_30 = arith.constant 0 : index
    %c0_31 = arith.constant 0 : index
    %c0_32 = arith.constant 0 : index
    %98 = vector.load %arg6[%c0_30, %c0_31, %c0_32] : memref<2x16x384xbf16, #tpu.memory_space<vmem>>, vector<2x16x384xbf16>
    %99 = vector.shape_cast %98 : vector<2x16x384xbf16> to vector<32x384xbf16>
    %c0_33 = arith.constant 0 : index
    %c0_34 = arith.constant 0 : index
    %100 = vector.load %arg3[%c0_33, %c0_34] : memref<384x384xbf16, #tpu.memory_space<vmem>>, vector<384x384xbf16>
    %cst_35 = arith.constant dense<0.000000e+00> : vector<32x384xf32>
    %101 = tpu.matmul %99, %100, %cst_35 {dimension_numbers = #tpu.dot_dimension_numbers<[1], [0], [0], [1], [0, 0, 1, 1], [], []>} : vector<32x384xbf16>, vector<384x384xbf16>, vector<32x384xf32> -> vector<32x384xf32>
    %102 = arith.addf %101, %1 : vector<32x384xf32>
    %103 = vector.shape_cast %102 : vector<32x384xf32> to vector<2x16x384xf32>
    %c0_36 = arith.constant 0 : index
    %c0_37 = arith.constant 0 : index
    %c0_38 = arith.constant 0 : index
    %104 = vector.load %arg5[%c0_36, %c0_37, %c0_38] : memref<2x16x384xf32, #tpu.memory_space<vmem>>, vector<2x16x384xf32>
    tpu.vector_store %arg5[%c0_36, %c0_37, %c0_38], %103 {strides = array<i32>} : memref<2x16x384xf32, #tpu.memory_space<vmem>>, vector<2x16x384xf32>,
    return
  }
  func.func @transform_0(%arg0: i32) -> (i32, i32, i32) {
    %c0_i32 = arith.constant 0 : i32
    %c0_i32_0 = arith.constant 0 : i32
    %c0_i32_1 = arith.constant 0 : i32
    return %arg0, %c0_i32, %c0_i32_0 : i32, i32, i32
  }
  func.func @transform_1(%arg0: i32) -> (i32, i32) {
    %c0_i32 = arith.constant 0 : i32
    %c0_i32_0 = arith.constant 0 : i32
    %c0_i32_1 = arith.constant 0 : i32
    return %c0_i32, %c0_i32_0 : i32, i32
  }
  func.func @transform_2(%arg0: i32) -> (i32, i32) {
    %c0_i32 = arith.constant 0 : i32
    %c0_i32_0 = arith.constant 0 : i32
    %c0_i32_1 = arith.constant 0 : i32
    return %c0_i32, %c0_i32_0 : i32, i32
  }
  func.func @transform_3(%arg0: i32) -> (i32, i32) {
    %c0_i32 = arith.constant 0 : i32
    %c0_i32_0 = arith.constant 0 : i32
    %c0_i32_1 = arith.constant 0 : i32
    return %c0_i32, %c0_i32_0 : i32, i32
  }
  func.func @transform_4(%arg0: i32) -> (i32, i32, i32) {
    %c0_i32 = arith.constant 0 : i32
    %c0_i32_0 = arith.constant 0 : i32
    %c0_i32_1 = arith.constant 0 : i32
    return %arg0, %c0_i32, %c0_i32_0 : i32, i32, i32
  }
}

</mosaic_0001>

<bundles_post_ra>
// kernel: tpu_custom_call.1
= control target key start
LH: loop header
LB: loop body
LE: loop exit
PB: predicated region body
PF: predicated region fallthrough
CT: control target
= control target key end

     0   :  { %9 = vsyncpa [#allocation4], 0  ;;  %s5126_s0 = inlined_call_operand.hbm [shape: f32[2,16,384], index: 0, kind: input, shape index: {}]   ;;  %s5127_s1 = inlined_call_operand.hbm [shape: bf16[384,1152], index: 1, kind: input, shape index: {}]   ;;  %s5128_s2 = inlined_call_operand.hbm [shape: bf16[384,384], index: 2, kind: input, shape index: {}]   ;;  %s5129_s3 = inlined_call_operand.hbm [shape: f32[16,16], index: 3, kind: input, shape index: {}]   ;;  %s5130_s4 = inlined_call_operand.hbm [shape: f32[2,16,384], index: 4, kind: output, shape index: {}]  }
   0x1   :  { %10 = vsyncpa [#allocation7], 0 }
   0x2   :  { %11 = vsyncpa [#allocation10], 0 }
   0x3   :  { %12 = vsyncpa [#allocation5], 0  ;;  %s4603_s15 = smov [#allocation6]   ;;  %s4485_s19 = scalar_lea.hbm %s5127_s1, 27648 }
   0x4   :  { %s30_s16 = sshll.u32 %s4603_s15, 4  ;;  %p4486_p0 = scmp.ne.s32.totalorder %s5127_s1, %s4485_s19  ;;  %s31_s16 = int_to_ptr.vmem [resolvable:$true] %s30_s16 }
   0x5   :  { %p4489_p1 = scmp.lt.u32.totalorder %s4485_s19, %s5127_s1 }
   0x7   :  { %p4491_p2 = pnand %p4489_p1, %p4486_p0 }
   0x9   :  { %4494 = shalt.err (!%p4491_p2)
}
   0xa   :  { %s4495_s24 = scalar_lea.vmem %s31_s16, 27648  ;;  %p4500_p4 = scmp.lt.s32.totalorder %s31_s16, %s31_s16 }
   0xb   :  { %p4496_p3 = scmp.ne.s32.totalorder %s31_s16, %s4495_s24  ;;  %p4501_p5 = scmp.lt.s32.totalorder %s4495_s24, %s4495_s24 }
   0xd   :  { %p4502_p6 = por %p4501_p5, %p4500_p4 }
   0xf   :  { %p4503_p7 = pnand %p4502_p6, %p4496_p3 }
  0x11   :  { %4506 = shalt.err (!%p4503_p7)
}
  0x12   :  { %s4604_s25 = smov 576   ;;  %s4605_s26 = smov 36  }
  0x13   :  { %36 = dma.hbm_to_vmem [thread:$0]  %s5127_s1, 27648, %s31_s16, [#allocation7], %s4604_s25, %s4604_s25, %s4605_s26  }
  0x14   :  { %s4606_s29 = smov [#allocation3]   ;;  %s4507_s7 = scalar_lea.hbm %s5126_s0, 1536 }
  0x15   :  { %s18_s30 = sshll.u32 %s4606_s29, 4  ;;  %p4508_p8 = scmp.ne.s32.totalorder %s5126_s0, %s4507_s7  ;;  %s19_s30 = int_to_ptr.vmem [resolvable:$true] %s18_s30 }
  0x16   :  { %p4511_p9 = scmp.lt.u32.totalorder %s4507_s7, %s5126_s0 }
  0x18   :  { %p4513_p10 = pnand %p4511_p9, %p4508_p8 }
  0x1a   :  { %4516 = shalt.err (!%p4513_p10)
}
  0x1b   :  { %s4517_s12 = scalar_lea.vmem %s19_s30, 1536  ;;  %p4522_p12 = scmp.lt.s32.totalorder %s19_s30, %s19_s30 }
  0x1c   :  { %p4518_p11 = scmp.ne.s32.totalorder %s19_s30, %s4517_s12  ;;  %p4523_p13 = scmp.lt.s32.totalorder %s4517_s12, %s4517_s12 }
  0x1e   :  { %p4524_p0 = por %p4523_p13, %p4522_p12 }
  0x20   :  { %p4525_p1 = pnand %p4524_p0, %p4518_p11 }
  0x22   :  { %4528 = shalt.err (!%p4525_p1)
}
  0x23   :  { %s4607_s1 = smov 384   ;;  %s4608_s13 = smov 24  }
  0x24   :  { %24 = dma.hbm_to_vmem [thread:$0]  %s5126_s0, 1536, %s19_s30, [#allocation4], %s4607_s1, %s4607_s1, %s4608_s13  }
  0x25   :  { %s4609_s16 = smov [#allocation8]   ;;  %s4529_s20 = scalar_lea.hbm %s5128_s2, 9216 }
  0x26   :  { %s42_s17 = sshll.u32 %s4609_s16, 4  ;;  %p4530_p2 = scmp.ne.s32.totalorder %s5128_s2, %s4529_s20  ;;  %s43_s17 = int_to_ptr.vmem [resolvable:$true] %s42_s17 }
  0x27   :  { %p4533_p3 = scmp.lt.u32.totalorder %s4529_s20, %s5128_s2 }
  0x29   :  { %p4535_p4 = pnand %p4533_p3, %p4530_p2 }
  0x2b   :  { %4538 = shalt.err (!%p4535_p4)
}
  0x2c   :  { %s4539_s25 = scalar_lea.vmem %s43_s17, 9216  ;;  %p4544_p6 = scmp.lt.s32.totalorder %s43_s17, %s43_s17 }
  0x2d   :  { %p4540_p5 = scmp.ne.s32.totalorder %s43_s17, %s4539_s25  ;;  %p4545_p7 = scmp.lt.s32.totalorder %s4539_s25, %s4539_s25 }
  0x2f   :  { %p4546_p8 = por %p4545_p7, %p4544_p6 }
  0x31   :  { %p4547_p9 = pnand %p4546_p8, %p4540_p5 }
  0x33   :  { %4550 = shalt.err (!%p4547_p9)
}
  0x34   :  { %s4610_s0 = smov 192   ;;  %s4611_s26 = smov 12  }
  0x35   :  { %48 = dma.hbm_to_vmem [thread:$0]  %s5128_s2, 9216, %s43_s17, [#allocation7], %s4610_s0, %s4610_s0, %s4611_s26  }
  0x36   :  { %s4612_s29 = smov [#allocation9]   ;;  %s4551_s7 = scalar_lea.hbm %s5129_s3, 256 }
  0x37   :  { %s54_s30 = sshll.u32 %s4612_s29, 4  ;;  %p4552_p10 = scmp.ne.s32.totalorder %s5129_s3, %s4551_s7  ;;  %s55_s30 = int_to_ptr.vmem [resolvable:$true] %s54_s30 }
  0x38   :  { %p4555_p11 = scmp.lt.u32.totalorder %s4551_s7, %s5129_s3 }
  0x3a   :  { %p4557_p12 = pnand %p4555_p11, %p4552_p10 }
  0x3c   :  { %4560 = shalt.err (!%p4557_p12)
}
  0x3d   :  { %s4561_s12 = scalar_lea.vmem %s55_s30, 256  ;;  %p4566_p0 = scmp.lt.s32.totalorder %s55_s30, %s55_s30 }
  0x3e   :  { %p4562_p13 = scmp.ne.s32.totalorder %s55_s30, %s4561_s12  ;;  %p4567_p1 = scmp.lt.s32.totalorder %s4561_s12, %s4561_s12 }
  0x40   :  { %p4568_p2 = por %p4567_p1, %p4566_p0 }
  0x42   :  { %p4569_p3 = pnand %p4568_p2, %p4562_p13 }
  0x44   :  { %4572 = shalt.err (!%p4569_p3)
}
  0x45   :  { %s4613_s2 = smov 128   ;;  %s4614_s14 = smov 8  }
  0x46   :  { %60 = dma.hbm_to_vmem [thread:$0]  %s5129_s3, 256, %s55_s30, [#allocation10], %s4613_s2, %s4613_s2, %s4614_s14  }
  0x47   :  { %4595 = dma.done.wait [#allocation4], 1536  }
  0x48   :  { %4596 = vsyncadd [#allocation4], 4294965760 }
  0x49   :  { %4597 = dma.done.wait [#allocation7], 36864  }
  0x4a   :  { %4598 = vsyncadd [#allocation7], 4294930432 }
  0x4b   :  { %4599 = dma.done.wait [#allocation10], 256  }
  0x4c   :  { %4600 = vsyncadd [#allocation10], 4294967040  ;;  %v4695_v0 = vld [vmem:[#allocation3] sm:$0xff]  ;;  %v4697_v1 = vld [vmem:[#allocation3 + $0x8] sm:$0xff]  ;;  %vm4617_vm0 = vmmov 0   ;;  %vm2133_vm1 = vcmask 130048  }
  0x4d   :  { %v4699_v2 = vld [vmem:[#allocation3 + $0x10] sm:$0xff]  ;;  %v86_v3 = vadd.f32 %v4697_v1, %v4695_v0  ;;  %v4705_v5 = vld [vmem:[#allocation3 + $0x38] sm:$0xff]  ;;  %v4707_v6 = vld [vmem:[#allocation3 + $0x40] sm:$0xff]  ;;  %s4618_s3 = smov [#allocation11]  }
  0x4e   :  { %v4703_v4 = vld [vmem:[#allocation3 + $0x30] sm:$0xff]  ;;  %v4711_v8 = vld [vmem:[#allocation3 + $0x18] sm:$0xff]  ;;  %v4713_v9 = vld [vmem:[#allocation3 + $0x20] sm:$0xff]  ;;  %s3437_s17 = sshll.u32 %s4618_s3, 4  ;;  %s3438_s17 = int_to_ptr.vmem [resolvable:$true] %s3437_s17 }
  0x4f   :  { %v94_v7 = vadd.f32 %v4705_v5, %v4703_v4  ;;  %v4715_v10 = vld [vmem:[#allocation3 + $0x28] sm:$0xff]  ;;  %v87_v11 = vadd.f32 %v86_v3, %v4699_v2  ;;  %v90_v12 = vadd.f32 %v4713_v9, %v4711_v8  ;;  %v4722_v14 = vld [vmem:[#allocation3 + $0x50] sm:$0xff]  ;;  %v4724_v15 = vld [vmem:[#allocation3 + $0x58] sm:$0xff]  ;;  %s4573_s18 = scalar_lea.vmem %s3438_s17, 1536  ;;  %p4578_p5 = scmp.lt.s32.totalorder %s3438_s17, %s3438_s17 }
  0x50   :  { %v4720_v13 = vld [vmem:[#allocation3 + $0x48] sm:$0xff]  ;;  %v4025_v22 = vld [vmem:[#allocation6] ss:$36 sps:$4 sm:$0xff]   ;;  %v4029_v25 = vld [vmem:[#allocation6 + $0x54] ss:$36 sps:$4 sm:$0xff]   ;;  %p4574_p4 = scmp.ne.s32.totalorder %s3438_s17, %s4573_s18  ;;  %p4579_p6 = scmp.lt.s32.totalorder %s4573_s18, %s4573_s18 }
  0x51   :  { %v95_v16 = vadd.f32 %v94_v7, %v4707_v6  ;;  %v98_v17 = vadd.f32 %v4722_v14, %v4720_v13  ;;  %88 = vadd.xlane.f32.xlu0 %v87_v11  ;;  %v91_v18 = vadd.f32 %v90_v12, %v4715_v10  ;;  %v4021_v20 = vld [vmem:[#allocation6 + $0x4] ss:$36 sps:$4 sm:$0xff]   ;;  %v4023_v21 = vld [vmem:[#allocation6 + $0xc] ss:$36 sps:$4 sm:$0xff]   ;;  %v4033_v28 = vld [vmem:[#allocation6 + $0x94] ss:$36 sps:$4 sm:$0xff]  }
  0x52   :  { %v4026_v23 = vld [vmem:[#allocation6 + $0x8] ss:$36 sps:$4 sm:$0xff]   ;;  %1521 = vmatprep.subr.bf16.mxu0 %v4021_v20  ;;  %1627 = vmatprep.subr.bf16.mxu1 %v4023_v21  ;;  %v4032_v27 = vld [vmem:[#allocation6 + $0x50] ss:$36 sps:$4 sm:$0xff]   ;;  %v4035_v29 = vld [vmem:[#allocation6 + $0x9c] ss:$36 sps:$4 sm:$0xff]   ;;  %p4580_p7 = por %p4579_p6, %p4578_p5 }
  0x53   :  { %96 = vadd.xlane.f32.xlu1 %v95_v16  ;;  %v99_v19 = vadd.f32 %v98_v17, %v4724_v15  ;;  %v4027_v24 = vld [vmem:[#allocation6 + $0x4c] ss:$36 sps:$4 sm:$0xff]   ;;  %1522 = vmatpush1.bf16.msra.mxu0 %v4025_v22  ;;  %v4038_v31 = vld [vmem:[#allocation6 + $0x98] ss:$36 sps:$4 sm:$0xff]   ;;  %v4041_v33 = vld [vmem:[#allocation6 + $0xe4] ss:$36 sps:$4 sm:$0xff]  }
  0x54   :  { %1628 = vmatpush1.bf16.msra.mxu1 %v4026_v23  ;;  %v4031_v26 = vld [vmem:[#allocation6 + $0x48] ss:$36 sps:$4 sm:$0xff]   ;;  %1523 = vmatprep.subr.bf16.mxu0 %v4027_v24  ;;  %v4037_v30 = vld [vmem:[#allocation6 + $0x90] ss:$36 sps:$4 sm:$0xff]   ;;  %v4039_v32 = vld [vmem:[#allocation6 + $0xdc] ss:$36 sps:$4 sm:$0xff]   ;;  %p4581_p8 = pnand %p4580_p7, %p4574_p4 }
  0x55   :  { %92 = vadd.xlane.f32.xlu0 %v91_v18  ;;  %1629 = vmatprep.subr.bf16.mxu1 %v4029_v25  ;;  %v4043_v34 = vld [vmem:[#allocation6 + $0xd8] ss:$36 sps:$4 sm:$0xff]   ;;  %v4044_v35 = vld [vmem:[#allocation6 + $0xe0] ss:$36 sps:$4 sm:$0xff]   ;;  %v4047_v37 = vld [vmem:[#allocation6 + $0x12c] ss:$36 sps:$4 sm:$0xff]  }
  0x56   :  { %v4045_v36 = vld [vmem:[#allocation6 + $0x124] ss:$36 sps:$4 sm:$0xff]   ;;  %v4051_v40 = vld [vmem:[#allocation6 + $0x16c] ss:$36 sps:$4 sm:$0xff]   ;;  %v4053_v41 = vld [vmem:[#allocation6 + $0x174] ss:$36 sps:$4 sm:$0xff]  }
  0x57   :  { %100 = vadd.xlane.f32.xlu1 %v99_v19  ;;  %1524 = vmatpush1.bf16.msra.mxu0 %v4031_v26  ;;  %v4049_v38 = vld [vmem:[#allocation6 + $0x120] ss:$36 sps:$4 sm:$0xff]   ;;  %v4050_v39 = vld [vmem:[#allocation6 + $0x128] ss:$36 sps:$4 sm:$0xff]   ;;  %v4056_v43 = vld [vmem:[#allocation6 + $0x170] ss:$36 sps:$4 sm:$0xff]  }
  0x58   :  { %1630 = vmatpush1.bf16.msra.mxu1 %v4032_v27  ;;  %1525 = vmatprep.subr.bf16.mxu0 %v4033_v28  ;;  %v4055_v42 = vld [vmem:[#allocation6 + $0x168] ss:$36 sps:$4 sm:$0xff]   ;;  %v4057_v44 = vld [vmem:[#allocation6 + $0x1b4] ss:$36 sps:$4 sm:$0xff]   ;;  %v4059_v45 = vld [vmem:[#allocation6 + $0x1bc] ss:$36 sps:$4 sm:$0xff]  }
  0x59   :  { %1631 = vmatprep.subr.bf16.mxu1 %v4035_v29  ;;  %v4061_v46 = vld [vmem:[#allocation6 + $0x1b0] ss:$36 sps:$4 sm:$0xff]   ;;  %v4062_v47 = vld [vmem:[#allocation6 + $0x1b8] ss:$36 sps:$4 sm:$0xff]   ;;  %v4065_v49 = vld [vmem:[#allocation6 + $0x204] ss:$36 sps:$4 sm:$0xff]  }
  0x5a   :  { %v4063_v48 = vld [vmem:[#allocation6 + $0x1fc] ss:$36 sps:$4 sm:$0xff]   ;;  %v4069_v52 = vld [vmem:[#allocation6 + $0x244] ss:$36 sps:$4 sm:$0xff]   ;;  %v4071_v53 = vld [vmem:[#allocation6 + $0x24c] ss:$36 sps:$4 sm:$0xff]  }
  0x5b   :  { %1526 = vmatpush1.bf16.msra.mxu0 %v4037_v30  ;;  %v4067_v50 = vld [vmem:[#allocation6 + $0x1f8] ss:$36 sps:$4 sm:$0xff]   ;;  %v4068_v51 = vld [vmem:[#allocation6 + $0x200] ss:$36 sps:$4 sm:$0xff]   ;;  %v4074_v55 = vld [vmem:[#allocation6 + $0x248] ss:$36 sps:$4 sm:$0xff]  }
  0x5c   :  { %1632 = vmatpush1.bf16.msra.mxu1 %v4038_v31  ;;  %1527 = vmatprep.subr.bf16.mxu0 %v4039_v32  ;;  %v4073_v54 = vld [vmem:[#allocation6 + $0x240] ss:$36 sps:$4 sm:$0xff]   ;;  %v4075_v56 = vld [vmem:[#allocation6 + $0x28c] ss:$36 sps:$4 sm:$0xff]   ;;  %v4077_v57 = vld [vmem:[#allocation6 + $0x294] ss:$36 sps:$4 sm:$0xff]  }
  0x5d   :  { %1633 = vmatprep.subr.bf16.mxu1 %v4041_v33  ;;  %v4079_v58 = vld [vmem:[#allocation6 + $0x288] ss:$36 sps:$4 sm:$0xff]   ;;  %v4080_v59 = vld [vmem:[#allocation6 + $0x290] ss:$36 sps:$4 sm:$0xff]   ;;  %v4083_v61 = vld [vmem:[#allocation6 + $0x2dc] ss:$36 sps:$4 sm:$0xff]  }
  0x5e   :  { %v4081_v60 = vld [vmem:[#allocation6 + $0x2d4] ss:$36 sps:$4 sm:$0xff]  }
  0x5f   :  { %1528 = vmatpush1.bf16.msra.mxu0 %v4043_v34 }
  0x60   :  { %1634 = vmatpush1.bf16.msra.mxu1 %v4044_v35  ;;  %1529 = vmatprep.subr.bf16.mxu0 %v4045_v36 }
  0x61   :  { %1635 = vmatprep.subr.bf16.mxu1 %v4047_v37 }
  0x63   :  { %1530 = vmatpush1.bf16.msra.mxu0 %v4049_v38  ;;  %v4085_v38 = vld [vmem:[#allocation6 + $0x2d0] ss:$36 sps:$4 sm:$0xff]  }
  0x64   :  { %1636 = vmatpush1.bf16.msra.mxu1 %v4050_v39  ;;  %1531 = vmatprep.subr.bf16.mxu0 %v4051_v40  ;;  %v4086_v39 = vld [vmem:[#allocation6 + $0x2d8] ss:$36 sps:$4 sm:$0xff]  }
  0x65   :  { %1637 = vmatprep.subr.bf16.mxu1 %v4053_v41  ;;  %v4087_v40 = vld [vmem:[#allocation6 + $0x31c] ss:$36 sps:$4 sm:$0xff]   ;;  %v4089_v41 = vld [vmem:[#allocation6 + $0x324] ss:$36 sps:$4 sm:$0xff]  }
  0x67   :  { %1532 = vmatpush1.bf16.msra.mxu0 %v4055_v42  ;;  %v4091_v42 = vld [vmem:[#allocation6 + $0x318] ss:$36 sps:$4 sm:$0xff]  }
  0x68   :  { %1638 = vmatpush1.bf16.msra.mxu1 %v4056_v43  ;;  %1533 = vmatprep.subr.bf16.mxu0 %v4057_v44  ;;  %v4092_v43 = vld [vmem:[#allocation6 + $0x320] ss:$36 sps:$4 sm:$0xff]  }
  0x69   :  { %1639 = vmatprep.subr.bf16.mxu1 %v4059_v45  ;;  %v4093_v44 = vld [vmem:[#allocation6 + $0x364] ss:$36 sps:$4 sm:$0xff]   ;;  %v4095_v45 = vld [vmem:[#allocation6 + $0x36c] ss:$36 sps:$4 sm:$0xff]  }
  0x6b   :  { %1534 = vmatpush1.bf16.msra.mxu0 %v4061_v46  ;;  %v4097_v46 = vld [vmem:[#allocation6 + $0x360] ss:$36 sps:$4 sm:$0xff]  }
  0x6c   :  { %1640 = vmatpush1.bf16.msra.mxu1 %v4062_v47  ;;  %1535 = vmatprep.subr.bf16.mxu0 %v4063_v48  ;;  %v4098_v47 = vld [vmem:[#allocation6 + $0x368] ss:$36 sps:$4 sm:$0xff]  }
  0x6d   :  { %1641 = vmatprep.subr.bf16.mxu1 %v4065_v49  ;;  %v4099_v48 = vld [vmem:[#allocation6 + $0x3ac] ss:$36 sps:$4 sm:$0xff]   ;;  %v4101_v49 = vld [vmem:[#allocation6 + $0x3b4] ss:$36 sps:$4 sm:$0xff]  }
  0x6f   :  { %1536 = vmatpush1.bf16.msra.mxu0 %v4067_v50  ;;  %v4103_v50 = vld [vmem:[#allocation6 + $0x3a8] ss:$36 sps:$4 sm:$0xff]  }
  0x70   :  { %1642 = vmatpush1.bf16.msra.mxu1 %v4068_v51  ;;  %1537 = vmatprep.subr.bf16.mxu0 %v4069_v52  ;;  %v4104_v51 = vld [vmem:[#allocation6 + $0x3b0] ss:$36 sps:$4 sm:$0xff]  }
  0x71   :  { %1643 = vmatprep.subr.bf16.mxu1 %v4071_v53  ;;  %v4105_v52 = vld [vmem:[#allocation6 + $0x3f4] ss:$36 sps:$4 sm:$0xff]   ;;  %v4107_v53 = vld [vmem:[#allocation6 + $0x3fc] ss:$36 sps:$4 sm:$0xff]  }
  0x73   :  { %1538 = vmatpush1.bf16.msra.mxu0 %v4073_v54  ;;  %v4109_v54 = vld [vmem:[#allocation6 + $0x3f0] ss:$36 sps:$4 sm:$0xff]  }
  0x74   :  { %1644 = vmatpush1.bf16.msra.mxu1 %v4074_v55  ;;  %1539 = vmatprep.subr.bf16.mxu0 %v4075_v56  ;;  %v4110_v55 = vld [vmem:[#allocation6 + $0x3f8] ss:$36 sps:$4 sm:$0xff]  }
  0x75   :  { %1645 = vmatprep.subr.bf16.mxu1 %v4077_v57  ;;  %v4111_v56 = vld [vmem:[#allocation6 + $0x43c] ss:$36 sps:$4 sm:$0xff]   ;;  %v4113_v57 = vld [vmem:[#allocation6 + $0x444] ss:$36 sps:$4 sm:$0xff]  }
  0x77   :  { %1540 = vmatpush1.bf16.msra.mxu0 %v4079_v58  ;;  %v4115_v58 = vld [vmem:[#allocation6 + $0x438] ss:$36 sps:$4 sm:$0xff]  }
  0x78   :  { %1646 = vmatpush1.bf16.msra.mxu1 %v4080_v59  ;;  %1541 = vmatprep.subr.bf16.mxu0 %v4081_v60  ;;  %v4116_v59 = vld [vmem:[#allocation6 + $0x440] ss:$36 sps:$4 sm:$0xff]  }
  0x79   :  { %1647 = vmatprep.subr.bf16.mxu1 %v4083_v61  ;;  %v4119_v60 = vld [vmem:[#allocation6 + $0x484] ss:$36 sps:$4 sm:$0xff]   ;;  %v4122_v61 = vld [vmem:[#allocation6 + $0x48c] ss:$36 sps:$4 sm:$0xff]  }
  0x7b   :  { %1542 = vmatpush1.bf16.msra.mxu0 %v4085_v38  ;;  %v4134_v38 = vld [vmem:[#allocation6 + $0x51c] ss:$36 sps:$4 sm:$0xff]  }
  0x7c   :  { %1648 = vmatpush1.bf16.msra.mxu1 %v4086_v39  ;;  %1543 = vmatprep.subr.bf16.mxu0 %v4087_v40  ;;  %v4129_v39 = vld [vmem:[#allocation6 + $0x510] ss:$36 sps:$4 sm:$0xff]   ;;  %v4132_v40 = vld [vmem:[#allocation6 + $0x518] ss:$36 sps:$4 sm:$0xff]  }
  0x7d   :  { %1649 = vmatprep.subr.bf16.mxu1 %v4089_v41 }
  0x7f   :  { %1544 = vmatpush1.bf16.msra.mxu0 %v4091_v42  ;;  %v4137_v42 = vld [vmem:[#allocation6 + $0x55c] ss:$36 sps:$4 sm:$0xff]  }
  0x80   :  { %1650 = vmatpush1.bf16.msra.mxu1 %v4092_v43  ;;  %1545 = vmatprep.subr.bf16.mxu0 %v4093_v44  ;;  %v4140_v43 = vld [vmem:[#allocation6 + $0x564] ss:$36 sps:$4 sm:$0xff]  }
  0x81   :  { %1651 = vmatprep.subr.bf16.mxu1 %v4095_v45  ;;  %v4138_v44 = vld [vmem:[#allocation6 + $0x560] ss:$36 sps:$4 sm:$0xff]   ;;  %v4146_v45 = vld [vmem:[#allocation6 + $0x5ac] ss:$36 sps:$4 sm:$0xff]  }
  0x83   :  { %1546 = vmatpush1.bf16.msra.mxu0 %v4097_v46  ;;  %v4615_v46 = vmov 0  }
  0x84   :  { %1652 = vmatpush1.bf16.msra.mxu1 %v4098_v47  ;;  %1547 = vmatprep.subr.bf16.mxu0 %v4099_v48  ;;  %v4141_v47 = vld [vmem:[#allocation6 + $0x5a0] ss:$36 sps:$4 sm:$0xff]   ;;  %v4144_v48 = vld [vmem:[#allocation6 + $0x5a8] ss:$36 sps:$4 sm:$0xff]  }
  0x85   :  { %1653 = vmatprep.subr.bf16.mxu1 %v4101_v49  ;;  %v4149_v49 = vld [vmem:[#allocation6 + $0x5ec] ss:$36 sps:$4 sm:$0xff]  }
  0x87   :  { %1548 = vmatpush1.bf16.msra.mxu0 %v4103_v50  ;;  %v4152_v50 = vld [vmem:[#allocation6 + $0x5f4] ss:$36 sps:$4 sm:$0xff]  }
  0x88   :  { %1654 = vmatpush1.bf16.msra.mxu1 %v4104_v51  ;;  %1549 = vmatprep.subr.bf16.mxu0 %v4105_v52  ;;  %v4147_v51 = vld [vmem:[#allocation6 + $0x5e8] ss:$36 sps:$4 sm:$0xff]   ;;  %v4150_v52 = vld [vmem:[#allocation6 + $0x5f0] ss:$36 sps:$4 sm:$0xff]  }
  0x89   :  { %1655 = vmatprep.subr.bf16.mxu1 %v4107_v53  ;;  %v4155_v53 = vld [vmem:[#allocation6 + $0x634] ss:$36 sps:$4 sm:$0xff]  }
  0x8b   :  { %1550 = vmatpush1.bf16.msra.mxu0 %v4109_v54  ;;  %v4158_v54 = vld [vmem:[#allocation6 + $0x63c] ss:$36 sps:$4 sm:$0xff]  }
  0x8c   :  { %1656 = vmatpush1.bf16.msra.mxu1 %v4110_v55  ;;  %1551 = vmatprep.subr.bf16.mxu0 %v4111_v56  ;;  %v4153_v55 = vld [vmem:[#allocation6 + $0x630] ss:$36 sps:$4 sm:$0xff]   ;;  %v4156_v56 = vld [vmem:[#allocation6 + $0x638] ss:$36 sps:$4 sm:$0xff]  }
  0x8d   :  { %1657 = vmatprep.subr.bf16.mxu1 %v4113_v57  ;;  %v4161_v57 = vld [vmem:[#allocation6 + $0x67c] ss:$36 sps:$4 sm:$0xff]  }
  0x8f   :  { %1552 = vmatpush1.bf16.msra.mxu0 %v4115_v58  ;;  %v4164_v58 = vld [vmem:[#allocation6 + $0x684] ss:$36 sps:$4 sm:$0xff]  }
  0x90   :  { %1658 = vmatpush1.bf16.msra.mxu1 %v4116_v59  ;;  %1574 = vmatprep.subr.bf16.mxu0 %v4119_v60  ;;  %v4159_v59 = vld [vmem:[#allocation6 + $0x678] ss:$36 sps:$4 sm:$0xff]   ;;  %v4162_v60 = vld [vmem:[#allocation6 + $0x680] ss:$36 sps:$4 sm:$0xff]  }
  0x91   :  { %1680 = vmatprep.subr.bf16.mxu1 %v4122_v61 }
  0xde   :  { %v89_v62 = vpop.xlane.xlu0 %88 }
  0xdf   :  { %v103_v63 = vmul.f32 0.0026041667, %v89_v62 }
  0xe0   :  { %v97_v3 = vpop.xlane.xlu1 %96 }
  0xe1   :  { %v105_v7 = vmul.f32 0.0026041667, %v97_v3  ;;  %v4732_v11 = vsub.f32 %v4695_v0, %v103_v63  ;;  %v4735_v12 = vsub.f32 %v4697_v1, %v103_v63  ;;  %v4738_v16 = vsub.f32 %v4699_v2, %v103_v63 }
  0xe2   :  { %v93_v20 = vpop.xlane.xlu0 %92 }
  0xe3   :  { %v4741_v17 = vsub.f32 %v4703_v4, %v105_v7  ;;  %v4744_v18 = vsub.f32 %v4705_v5, %v105_v7  ;;  %v4747_v19 = vsub.f32 %v4707_v6, %v105_v7  ;;  %v104_v21 = vmul.f32 0.0026041667, %v93_v20 }
  0xe4   :  { %v101_v22 = vpop.xlane.xlu1 %100  ;;  %v119_v0 = vmul.f32 %v4732_v11, %v4732_v11  ;;  %v120_v1 = vmul.f32 %v4735_v12, %v4735_v12  ;;  %v121_v2 = vmul.f32 %v4738_v16, %v4738_v16 }
  0xe5   :  { %v106_v4 = vmul.f32 0.0026041667, %v101_v22  ;;  %v125_v5 = vmul.f32 %v4741_v17, %v4741_v17  ;;  %v126_v6 = vmul.f32 %v4744_v18, %v4744_v18  ;;  %v127_v23 = vmul.f32 %v4747_v19, %v4747_v19 }
  0xe6   :  { %v4762_v24 = vsub.f32 %v4711_v8, %v104_v21  ;;  %v4765_v25 = vsub.f32 %v4713_v9, %v104_v21  ;;  %v4768_v26 = vsub.f32 %v4715_v10, %v104_v21  ;;  %v131_v27 = vadd.f32 %v120_v1, %v119_v0 }
  0xe7   :  { %v4771_v28 = vsub.f32 %v4720_v13, %v106_v4  ;;  %v4774_v29 = vsub.f32 %v4722_v14, %v106_v4  ;;  %v4777_v30 = vsub.f32 %v4724_v15, %v106_v4  ;;  %v139_v31 = vadd.f32 %v126_v6, %v125_v5 }
  0xe8   :  { %v132_v32 = vadd.f32 %v131_v27, %v121_v2  ;;  %v122_v8 = vmul.f32 %v4762_v24, %v4762_v24  ;;  %v123_v9 = vmul.f32 %v4765_v25, %v4765_v25  ;;  %v124_v15 = vmul.f32 %v4768_v26, %v4768_v26 }
  0xe9   :  { %v128_v10 = vmul.f32 %v4771_v28, %v4771_v28  ;;  %v129_v13 = vmul.f32 %v4774_v29, %v4774_v29  ;;  %v140_v14 = vadd.f32 %v139_v31, %v127_v23  ;;  %v130_v34 = vmul.f32 %v4777_v30, %v4777_v30 }
  0xea   :  { %133 = vadd.xlane.f32.xlu0 %v132_v32  ;;  %v135_v33 = vadd.f32 %v123_v9, %v122_v8 }
  0xeb   :  { %v143_v35 = vadd.f32 %v129_v13, %v128_v10  ;;  %v4117_v13 = vld [vmem:[#allocation6 + $0x480] ss:$36 sps:$4 sm:$0xff]  }
  0xec   :  { %v136_v36 = vadd.f32 %v135_v33, %v124_v15 }
  0xed   :  { %v144_v37 = vadd.f32 %v143_v35, %v130_v34  ;;  %v4128_v34 = vld [vmem:[#allocation6 + $0x4d4] ss:$36 sps:$4 sm:$0xff]   ;;  %v4123_v35 = vld [vmem:[#allocation6 + $0x4c8] ss:$36 sps:$4 sm:$0xff]  }
  0xee   :  { %141 = vadd.xlane.f32.xlu0 %v140_v14  ;;  %137 = vadd.xlane.f32.xlu1 %v136_v36  ;;  %v4120_v14 = vld [vmem:[#allocation6 + $0x488] ss:$36 sps:$4 sm:$0xff]   ;;  %v4126_v36 = vld [vmem:[#allocation6 + $0x4d0] ss:$36 sps:$4 sm:$0xff]  }
  0xf2   :  { %145 = vadd.xlane.f32.xlu1 %v144_v37  ;;  %v4131_v37 = vld [vmem:[#allocation6 + $0x514] ss:$36 sps:$4 sm:$0xff]  }
 0x177   :  { %v134_v62 = vpop.xlane.xlu0 %133 }
 0x178   :  { %v147_v63 = vmul.f32 0.0026041667, %v134_v62  ;;  %v4167_v62 = vld [vmem:[#allocation6 + $0x14] ss:$36 sps:$4 sm:$0xff]  }
 0x17a   :  { %v151_v3 = vadd.f32 1e-05, %v147_v63  ;;  %v4170_v63 = vld [vmem:[#allocation6 + $0x1c] ss:$36 sps:$4 sm:$0xff]  }
 0x17b   :  { %v138_v7 = vpop.xlane.xlu1 %137  ;;  %v142_v20 = vpop.xlane.xlu0 %141 }
 0x17c   :  { %v148_v21 = vmul.f32 0.0026041667, %v138_v7  ;;  %v149_v22 = vmul.f32 0.0026041667, %v142_v20  ;;  %4429 = vrsqrt.f32 %v151_v3  ;;  %v4165_v7 = vld [vmem:[#allocation6 + $0x10] ss:$36 sps:$4 sm:$0xff]  }
 0x17d   :  { %v4168_v20 = vld [vmem:[#allocation6 + $0x18] ss:$36 sps:$4 sm:$0xff]  }
 0x17e   :  { %v152_v0 = vadd.f32 1e-05, %v148_v21  ;;  %v153_v1 = vadd.f32 1e-05, %v149_v22  ;;  %v4173_v22 = vld [vmem:[#allocation6 + $0x5c] ss:$36 sps:$4 sm:$0xff]  }
 0x17f   :  { %v146_v2 = vpop.xlane.xlu1 %145 }
 0x180   :  { %4431 = vrsqrt.f32 %v152_v0  ;;  %v150_v4 = vmul.f32 0.0026041667, %v146_v2  ;;  %v4176_v0 = vld [vmem:[#allocation6 + $0x64] ss:$36 sps:$4 sm:$0xff]  }
 0x181   :  { %4433 = vrsqrt.f32 %v153_v1  ;;  %v4174_v1 = vld [vmem:[#allocation6 + $0x60] ss:$36 sps:$4 sm:$0xff]  }
 0x182   :  { %v154_v5 = vadd.f32 1e-05, %v150_v4  ;;  %v4179_v2 = vld [vmem:[#allocation6 + $0xa4] ss:$36 sps:$4 sm:$0xff]   ;;  %v4182_v4 = vld [vmem:[#allocation6 + $0xac] ss:$36 sps:$4 sm:$0xff]  }
 0x184   :  { %4435 = vrsqrt.f32 %v154_v5 }
 0x186   :  { %v4791_v6 = vpop.eup %4429 }
 0x187   :  { %v160_v27 = vmul.f32 %v4791_v6, %v4735_v12  ;;  %v159_v32 = vmul.f32 %v4791_v6, %v4732_v11  ;;  %v4125_v12 = vld [vmem:[#allocation6 + $0x4cc] ss:$36 sps:$4 sm:$0xff]   ;;  %v161_v3 = vmul.f32 %v4791_v6, %v4738_v16  ;;  %v4177_v6 = vld [vmem:[#allocation6 + $0xa0] ss:$36 sps:$4 sm:$0xff]  }
 0x18a   :  { %v4793_v23 = vpop.eup %4431 }
 0x18b   :  { %v163_v31 = vmul.f32 %v4793_v23, %v4765_v25  ;;  %v162_v8 = vmul.f32 %v4793_v23, %v4762_v24  ;;  %v4803_v9 = vpop.eup %4433  ;;  %v164_v61 = vmul.f32 %v4793_v23, %v4768_v26  ;;  %v4171_v26 = vld [vmem:[#allocation6 + $0x58] ss:$36 sps:$4 sm:$0xff]  }
 0x18c   :  { %v166_v11 = vmul.f32 %v4803_v9, %v4744_v18  ;;  %v167_v5 = vmul.f32 %v4803_v9, %v4747_v19  ;;  %v4186_v19 = vld [vmem:[#allocation6 + $0xf0] ss:$36 sps:$4 sm:$0xff]  }
 0x18d   :  { %v4805_v10 = vpack.c.bf16 %v163_v31, %v160_v27  ;;  %v4807_v15 = vpack.c.bf16 %v162_v8, %v159_v32  ;;  %v4837_v21 = vpack.c.bf16 %v164_v61, %v161_v3  ;;  %v4180_v27 = vld [vmem:[#allocation6 + $0xa8] ss:$36 sps:$4 sm:$0xff]   ;;  %v4188_v32 = vld [vmem:[#allocation6 + $0xf4] ss:$36 sps:$4 sm:$0xff]  }
 0x18e   :  { %v4809_v33 = vpop.eup %4435  ;;  %v4185_v31 = vld [vmem:[#allocation6 + $0xec] ss:$36 sps:$4 sm:$0xff]   ;;  %v4191_v8 = vld [vmem:[#allocation6 + $0x134] ss:$36 sps:$4 sm:$0xff]   ;;  %v4248_v61 = vld [vmem:[#allocation6 + $0x3c4] ss:$36 sps:$4 sm:$0xff]  }
 0x18f   :  { %1553 = vmatprep.mubr.bf16.mxu0 %v4805_v10  ;;  %1659 = vmatprep.mubr.bf16.mxu1 %v4805_v10  ;;  %v169_v24 = vmul.f32 %v4809_v33, %v4774_v29  ;;  %v168_v18 = vmul.f32 %v4809_v33, %v4771_v28  ;;  %v165_v29 = vmul.f32 %v4803_v9, %v4741_v17  ;;  %v4135_v28 = vld [vmem:[#allocation6 + $0x558] ss:$36 sps:$4 sm:$0xff]   ;;  %v4143_v17 = vld [vmem:[#allocation6 + $0x5a4] ss:$36 sps:$4 sm:$0xff]  }
 0x190   :  { %1554 = vmatmul.mubr.bf16.vlgmr.msra.gmra.mrb[0].mxu0 %v4807_v15  ;;  %1660 = vmatmul.mubr.bf16.vlgmr.msra.gmra.mrb[0].mxu1 %v4807_v15  ;;  %v170_v16 = vmul.f32 %v4809_v33, %v4777_v30  ;;  %v4183_v30 = vld [vmem:[#allocation6 + $0xe8] ss:$36 sps:$4 sm:$0xff]   ;;  %v4194_v9 = vld [vmem:[#allocation6 + $0x13c] ss:$36 sps:$4 sm:$0xff]  }
 0x191   :  { %1575 = vmatpush1.bf16.msra.mxu0 %v4117_v13  ;;  %1681 = vmatpush1.bf16.msra.mxu1 %v4120_v14  ;;  %v4819_v25 = vpack.c.bf16 %v169_v24, %v166_v11  ;;  %v4827_v41 = vpack.c.bf16 %v168_v18, %v165_v29  ;;  %v4189_v13 = vld [vmem:[#allocation6 + $0x130] ss:$36 sps:$4 sm:$0xff]   ;;  %v4192_v14 = vld [vmem:[#allocation6 + $0x138] ss:$36 sps:$4 sm:$0xff]   ;;  %v4198_v11 = vld [vmem:[#allocation6 + $0x180] ss:$36 sps:$4 sm:$0xff]  }
 0x192   :  { %1576 = vmatprep.subr.bf16.mxu0 %v4125_v12  ;;  %1682 = vmatprep.subr.bf16.mxu1 %v4128_v34  ;;  %v4847_v23 = vpack.c.bf16 %v170_v16, %v167_v5  ;;  %v4197_v33 = vld [vmem:[#allocation6 + $0x17c] ss:$36 sps:$4 sm:$0xff]   ;;  %v4200_v12 = vld [vmem:[#allocation6 + $0x184] ss:$36 sps:$4 sm:$0xff]   ;;  %v4212_v18 = vld [vmem:[#allocation6 + $0x214] ss:$36 sps:$4 sm:$0xff]  }
 0x193   :  { %1563 = vmatprep.mubr.bf16.mxu0 %v4819_v25  ;;  %1669 = vmatprep.mubr.bf16.mxu1 %v4819_v25  ;;  %v4195_v34 = vld [vmem:[#allocation6 + $0x178] ss:$36 sps:$4 sm:$0xff]   ;;  %v4203_v24 = vld [vmem:[#allocation6 + $0x1c4] ss:$36 sps:$4 sm:$0xff]   ;;  %v4258_v16 = vld [vmem:[#allocation6 + $0x450] ss:$36 sps:$4 sm:$0xff]  }
 0x194   :  { %v4207_v29 = vld [vmem:[#allocation6 + $0x208] ss:$36 sps:$4 sm:$0xff]   ;;  %v4261_v5 = vld [vmem:[#allocation6 + $0x490] ss:$36 sps:$4 sm:$0xff]  }
 0x195   :  { %1577 = vmatpush1.bf16.msra.mxu0 %v4123_v35  ;;  %1683 = vmatpush1.bf16.msra.mxu1 %v4126_v36  ;;  %v4206_v35 = vld [vmem:[#allocation6 + $0x1cc] ss:$36 sps:$4 sm:$0xff]   ;;  %v4201_v36 = vld [vmem:[#allocation6 + $0x1c0] ss:$36 sps:$4 sm:$0xff]  }
 0x196   :  { %1578 = vmatprep.subr.bf16.mxu0 %v4131_v37  ;;  %1684 = vmatprep.subr.bf16.mxu1 %v4134_v38  ;;  %v4204_v37 = vld [vmem:[#allocation6 + $0x1c8] ss:$36 sps:$4 sm:$0xff]  }
 0x197   :  { %v4209_v38 = vld [vmem:[#allocation6 + $0x20c] ss:$36 sps:$4 sm:$0xff]   ;;  %v4251_v3 = vld [vmem:[#allocation6 + $0x404] ss:$36 sps:$4 sm:$0xff]  }
 0x198   :  { %1564 = vmatmul.mubr.bf16.gmra.mrb[4].mxu0 %v4827_v41  ;;  %1670 = vmatmul.mubr.bf16.gmra.mrb[4].mxu1 %v4827_v41 }
 0x199   :  { %1579 = vmatpush1.bf16.msra.mxu0 %v4129_v39  ;;  %1685 = vmatpush1.bf16.msra.mxu1 %v4132_v40  ;;  %v4210_v39 = vld [vmem:[#allocation6 + $0x210] ss:$36 sps:$4 sm:$0xff]  }
 0x19a   :  { %1580 = vmatprep.subr.bf16.mxu0 %v4137_v42  ;;  %1686 = vmatprep.subr.bf16.mxu1 %v4140_v43  ;;  %v4215_v40 = vld [vmem:[#allocation6 + $0x254] ss:$36 sps:$4 sm:$0xff]   ;;  %v4218_v42 = vld [vmem:[#allocation6 + $0x25c] ss:$36 sps:$4 sm:$0xff]  }
 0x19b   :  { %1606 = vmatprep.mubr.bf16.mxu0 %v4615_v46  ;;  %1712 = vmatprep.mubr.bf16.mxu1 %v4615_v46  ;;  %v4213_v43 = vld [vmem:[#allocation6 + $0x250] ss:$36 sps:$4 sm:$0xff]  }
 0x19d   :  { %1581 = vmatpush1.bf16.msra.mxu0 %v4135_v28  ;;  %1687 = vmatpush1.bf16.msra.mxu1 %v4138_v44  ;;  %v4216_v28 = vld [vmem:[#allocation6 + $0x258] ss:$36 sps:$4 sm:$0xff]  }
 0x19e   :  { %1582 = vmatprep.subr.bf16.mxu0 %v4143_v17  ;;  %1688 = vmatprep.subr.bf16.mxu1 %v4146_v45  ;;  %v4221_v44 = vld [vmem:[#allocation6 + $0x29c] ss:$36 sps:$4 sm:$0xff]   ;;  %v4224_v17 = vld [vmem:[#allocation6 + $0x2a4] ss:$36 sps:$4 sm:$0xff]  }
 0x19f   :  { %v4219_v45 = vld [vmem:[#allocation6 + $0x298] ss:$36 sps:$4 sm:$0xff]  }
 0x1a1   :  { %1583 = vmatpush1.bf16.msra.mxu0 %v4141_v47  ;;  %1689 = vmatpush1.bf16.msra.mxu1 %v4144_v48  ;;  %v4222_v47 = vld [vmem:[#allocation6 + $0x2a0] ss:$36 sps:$4 sm:$0xff]  }
 0x1a2   :  { %1584 = vmatprep.subr.bf16.mxu0 %v4149_v49  ;;  %1690 = vmatprep.subr.bf16.mxu1 %v4152_v50  ;;  %v4227_v48 = vld [vmem:[#allocation6 + $0x2e4] ss:$36 sps:$4 sm:$0xff]   ;;  %v4230_v49 = vld [vmem:[#allocation6 + $0x2ec] ss:$36 sps:$4 sm:$0xff]  }
 0x1a3   :  { %v4225_v50 = vld [vmem:[#allocation6 + $0x2e0] ss:$36 sps:$4 sm:$0xff]  }
 0x1a5   :  { %1585 = vmatpush1.bf16.msra.mxu0 %v4147_v51  ;;  %1691 = vmatpush1.bf16.msra.mxu1 %v4150_v52  ;;  %v4228_v51 = vld [vmem:[#allocation6 + $0x2e8] ss:$36 sps:$4 sm:$0xff]  }
 0x1a6   :  { %1586 = vmatprep.subr.bf16.mxu0 %v4155_v53  ;;  %1692 = vmatprep.subr.bf16.mxu1 %v4158_v54  ;;  %v4233_v52 = vld [vmem:[#allocation6 + $0x32c] ss:$36 sps:$4 sm:$0xff]   ;;  %v4236_v53 = vld [vmem:[#allocation6 + $0x334] ss:$36 sps:$4 sm:$0xff]  }
 0x1a7   :  { %v4231_v54 = vld [vmem:[#allocation6 + $0x328] ss:$36 sps:$4 sm:$0xff]  }
 0x1a9   :  { %1587 = vmatpush1.bf16.msra.mxu0 %v4153_v55  ;;  %1693 = vmatpush1.bf16.msra.mxu1 %v4156_v56  ;;  %v4234_v55 = vld [vmem:[#allocation6 + $0x330] ss:$36 sps:$4 sm:$0xff]  }
 0x1aa   :  { %1588 = vmatprep.subr.bf16.mxu0 %v4161_v57  ;;  %1694 = vmatprep.subr.bf16.mxu1 %v4164_v58  ;;  %v4239_v56 = vld [vmem:[#allocation6 + $0x374] ss:$36 sps:$4 sm:$0xff]   ;;  %v4242_v57 = vld [vmem:[#allocation6 + $0x37c] ss:$36 sps:$4 sm:$0xff]  }
 0x1ab   :  { %v4237_v58 = vld [vmem:[#allocation6 + $0x370] ss:$36 sps:$4 sm:$0xff]  }
 0x1ad   :  { %1589 = vmatpush1.bf16.msra.mxu0 %v4159_v59  ;;  %1695 = vmatpush1.bf16.msra.mxu1 %v4162_v60  ;;  %v4240_v59 = vld [vmem:[#allocation6 + $0x378] ss:$36 sps:$4 sm:$0xff]  }
 0x1ae   :  { %1733 = vmatprep.subr.bf16.mxu0 %v4167_v62  ;;  %1839 = vmatprep.subr.bf16.mxu1 %v4170_v63  ;;  %v4245_v60 = vld [vmem:[#allocation6 + $0x3bc] ss:$36 sps:$4 sm:$0xff]  }
 0x1af   :  { %v4243_v62 = vld [vmem:[#allocation6 + $0x3b8] ss:$36 sps:$4 sm:$0xff]   ;;  %v4246_v63 = vld [vmem:[#allocation6 + $0x3c0] ss:$36 sps:$4 sm:$0xff]  }
 0x1b0   :  { %1607 = vmatmul.mubr.bf16.vlgmr.msra.gmra.mrb[0].mxu0 %v4837_v21  ;;  %1713 = vmatmul.mubr.bf16.vlgmr.msra.gmra.mrb[0].mxu1 %v4837_v21 }
 0x1b1   :  { %1734 = vmatpush1.bf16.msra.mxu0 %v4165_v7  ;;  %1840 = vmatpush1.bf16.msra.mxu1 %v4168_v20  ;;  %v4254_v7 = vld [vmem:[#allocation6 + $0x40c] ss:$36 sps:$4 sm:$0xff]   ;;  %v4249_v20 = vld [vmem:[#allocation6 + $0x400] ss:$36 sps:$4 sm:$0xff]  }
 0x1b2   :  { %1735 = vmatprep.subr.bf16.mxu0 %v4173_v22  ;;  %1841 = vmatprep.subr.bf16.mxu1 %v4176_v0  ;;  %v4252_v22 = vld [vmem:[#allocation6 + $0x408] ss:$36 sps:$4 sm:$0xff]  }
 0x1b3   :  { %1616 = vmatprep.mubr.bf16.mxu0 %v4615_v46  ;;  %1722 = vmatprep.mubr.bf16.mxu1 %v4615_v46  ;;  %v4257_v0 = vld [vmem:[#allocation6 + $0x44c] ss:$36 sps:$4 sm:$0xff]  }
 0x1b5   :  { %1736 = vmatpush1.bf16.msra.mxu0 %v4171_v26  ;;  %1842 = vmatpush1.bf16.msra.mxu1 %v4174_v1  ;;  %v4260_v26 = vld [vmem:[#allocation6 + $0x454] ss:$36 sps:$4 sm:$0xff]   ;;  %v4255_v1 = vld [vmem:[#allocation6 + $0x448] ss:$36 sps:$4 sm:$0xff]  }
 0x1b6   :  { %1737 = vmatprep.subr.bf16.mxu0 %v4179_v2  ;;  %1843 = vmatprep.subr.bf16.mxu1 %v4182_v4  ;;  %v4263_v2 = vld [vmem:[#allocation6 + $0x494] ss:$36 sps:$4 sm:$0xff]   ;;  %v4266_v4 = vld [vmem:[#allocation6 + $0x49c] ss:$36 sps:$4 sm:$0xff]  }
 0x1b8   :  { %1617 = vmatmul.mubr.bf16.gmra.mrb[4].mxu0 %v4847_v23  ;;  %1723 = vmatmul.mubr.bf16.gmra.mrb[4].mxu1 %v4847_v23 }
 0x1b9   :  { %1738 = vmatpush1.bf16.msra.mxu0 %v4177_v6  ;;  %1765 = vmatprep.mubr.bf16.mxu0 %v4805_v10  ;;  %v4264_v6 = vld [vmem:[#allocation6 + $0x498] ss:$36 sps:$4 sm:$0xff]  }
 0x1ba   :  { %1844 = vmatpush1.bf16.msra.mxu1 %v4180_v27  ;;  %1871 = vmatprep.mubr.bf16.mxu1 %v4805_v10  ;;  %v4269_v27 = vld [vmem:[#allocation6 + $0x4dc] ss:$36 sps:$4 sm:$0xff]  }
 0x1bb   :  { %1739 = vmatprep.subr.bf16.mxu0 %v4185_v31  ;;  %1845 = vmatprep.subr.bf16.mxu1 %v4188_v32  ;;  %v4272_v31 = vld [vmem:[#allocation6 + $0x4e4] ss:$36 sps:$4 sm:$0xff]   ;;  %v4267_v32 = vld [vmem:[#allocation6 + $0x4d8] ss:$36 sps:$4 sm:$0xff]  }
 0x1bd   :  { %1740 = vmatpush1.bf16.msra.mxu0 %v4183_v30  ;;  %v4270_v30 = vld [vmem:[#allocation6 + $0x4e0] ss:$36 sps:$4 sm:$0xff]  }
 0x1be   :  { %1846 = vmatpush1.bf16.msra.mxu1 %v4186_v19  ;;  %1741 = vmatprep.subr.bf16.mxu0 %v4191_v8  ;;  %v4275_v19 = vld [vmem:[#allocation6 + $0x524] ss:$36 sps:$4 sm:$0xff]   ;;  %v4278_v8 = vld [vmem:[#allocation6 + $0x52c] ss:$36 sps:$4 sm:$0xff]  }
 0x1bf   :  { %1847 = vmatprep.subr.bf16.mxu1 %v4194_v9  ;;  %v4273_v9 = vld [vmem:[#allocation6 + $0x520] ss:$36 sps:$4 sm:$0xff]  }
 0x1c1   :  { %1742 = vmatpush1.bf16.msra.mxu0 %v4189_v13  ;;  %v4276_v13 = vld [vmem:[#allocation6 + $0x528] ss:$36 sps:$4 sm:$0xff]  }
 0x1c2   :  { %1848 = vmatpush1.bf16.msra.mxu1 %v4192_v14  ;;  %1743 = vmatprep.subr.bf16.mxu0 %v4197_v33  ;;  %v4281_v14 = vld [vmem:[#allocation6 + $0x56c] ss:$36 sps:$4 sm:$0xff]   ;;  %v4284_v33 = vld [vmem:[#allocation6 + $0x574] ss:$36 sps:$4 sm:$0xff]  }
 0x1c3   :  { %1849 = vmatprep.subr.bf16.mxu1 %v4200_v12  ;;  %v4279_v12 = vld [vmem:[#allocation6 + $0x568] ss:$36 sps:$4 sm:$0xff]  }
 0x1c5   :  { %1744 = vmatpush1.bf16.msra.mxu0 %v4195_v34  ;;  %v4282_v34 = vld [vmem:[#allocation6 + $0x570] ss:$36 sps:$4 sm:$0xff]  }
 0x1c6   :  { %1850 = vmatpush1.bf16.msra.mxu1 %v4198_v11  ;;  %1745 = vmatprep.subr.bf16.mxu0 %v4203_v24  ;;  %v4287_v11 = vld [vmem:[#allocation6 + $0x5b4] ss:$36 sps:$4 sm:$0xff]   ;;  %v4290_v24 = vld [vmem:[#allocation6 + $0x5bc] ss:$36 sps:$4 sm:$0xff]  }
 0x1c7   :  { %1851 = vmatprep.subr.bf16.mxu1 %v4206_v35  ;;  %v4285_v35 = vld [vmem:[#allocation6 + $0x5b0] ss:$36 sps:$4 sm:$0xff]  }
 0x1c9   :  { %1746 = vmatpush1.bf16.msra.mxu0 %v4201_v36  ;;  %v4288_v36 = vld [vmem:[#allocation6 + $0x5b8] ss:$36 sps:$4 sm:$0xff]  }
 0x1ca   :  { %1852 = vmatpush1.bf16.msra.mxu1 %v4204_v37  ;;  %1747 = vmatprep.subr.bf16.mxu0 %v4209_v38  ;;  %v4293_v37 = vld [vmem:[#allocation6 + $0x5fc] ss:$36 sps:$4 sm:$0xff]   ;;  %v4296_v38 = vld [vmem:[#allocation6 + $0x604] ss:$36 sps:$4 sm:$0xff]  }
 0x1cb   :  { %1853 = vmatprep.subr.bf16.mxu1 %v4212_v18  ;;  %v4291_v18 = vld [vmem:[#allocation6 + $0x5f8] ss:$36 sps:$4 sm:$0xff]  }
 0x1cd   :  { %1748 = vmatpush1.bf16.msra.mxu0 %v4207_v29  ;;  %v4294_v29 = vld [vmem:[#allocation6 + $0x600] ss:$36 sps:$4 sm:$0xff]  }
 0x1ce   :  { %1854 = vmatpush1.bf16.msra.mxu1 %v4210_v39  ;;  %1749 = vmatprep.subr.bf16.mxu0 %v4215_v40  ;;  %v4299_v39 = vld [vmem:[#allocation6 + $0x644] ss:$36 sps:$4 sm:$0xff]   ;;  %v4302_v40 = vld [vmem:[#allocation6 + $0x64c] ss:$36 sps:$4 sm:$0xff]  }
 0x1cf   :  { %1855 = vmatprep.subr.bf16.mxu1 %v4218_v42  ;;  %v4297_v42 = vld [vmem:[#allocation6 + $0x640] ss:$36 sps:$4 sm:$0xff]  }
 0x1d1   :  { %1750 = vmatpush1.bf16.msra.mxu0 %v4213_v43  ;;  %v4300_v43 = vld [vmem:[#allocation6 + $0x648] ss:$36 sps:$4 sm:$0xff]  }
 0x1d2   :  { %1856 = vmatpush1.bf16.msra.mxu1 %v4216_v28  ;;  %1751 = vmatprep.subr.bf16.mxu0 %v4221_v44  ;;  %v4305_v28 = vld [vmem:[#allocation6 + $0x68c] ss:$36 sps:$4 sm:$0xff]   ;;  %v4308_v44 = vld [vmem:[#allocation6 + $0x694] ss:$36 sps:$4 sm:$0xff]  }
 0x1d3   :  { %1857 = vmatprep.subr.bf16.mxu1 %v4224_v17  ;;  %v4303_v17 = vld [vmem:[#allocation6 + $0x688] ss:$36 sps:$4 sm:$0xff]  }
 0x1d5   :  { %1752 = vmatpush1.bf16.msra.mxu0 %v4219_v45  ;;  %v4306_v45 = vld [vmem:[#allocation6 + $0x690] ss:$36 sps:$4 sm:$0xff]  }
 0x1d6   :  { %1858 = vmatpush1.bf16.msra.mxu1 %v4222_v47  ;;  %1753 = vmatprep.subr.bf16.mxu0 %v4227_v48  ;;  %v4309_v47 = vld [vmem:[#allocation6 + $0x260] ss:$36 sps:$4 sm:$0xff]  }
 0x1d7   :  { %1859 = vmatprep.subr.bf16.mxu1 %v4230_v49  ;;  %v4310_v48 = vld [vmem:[#allocation6 + $0x20] ss:$36 sps:$4 sm:$0xff]   ;;  %v4311_v49 = vld [vmem:[#allocation6 + $0x2a8] ss:$36 sps:$4 sm:$0xff]  }
 0x1d9   :  { %1754 = vmatpush1.bf16.msra.mxu0 %v4225_v50  ;;  %v4616_v50 = vmov 0.0  }
 0x1da   :  { %1860 = vmatpush1.bf16.msra.mxu1 %v4228_v51  ;;  %1755 = vmatprep.subr.bf16.mxu0 %v4233_v52  ;;  %v4312_v51 = vld [vmem:[#allocation6 + $0x68] ss:$36 sps:$4 sm:$0xff]   ;;  %v4313_v52 = vld [vmem:[#allocation6 + $0x2f0] ss:$36 sps:$4 sm:$0xff]  }
 0x1db   :  { %1861 = vmatprep.subr.bf16.mxu1 %v4236_v53  ;;  %v4314_v53 = vld [vmem:[#allocation6 + $0xb0] ss:$36 sps:$4 sm:$0xff]  }
 0x1dd   :  { %1756 = vmatpush1.bf16.msra.mxu0 %v4231_v54  ;;  %v4315_v54 = vld [vmem:[#allocation6 + $0x338] ss:$36 sps:$4 sm:$0xff]  }
 0x1de   :  { %1862 = vmatpush1.bf16.msra.mxu1 %v4234_v55  ;;  %1757 = vmatprep.subr.bf16.mxu0 %v4239_v56  ;;  %v4316_v55 = vld [vmem:[#allocation6 + $0xf8] ss:$36 sps:$4 sm:$0xff]   ;;  %v4317_v56 = vld [vmem:[#allocation6 + $0x380] ss:$36 sps:$4 sm:$0xff]  }
 0x1df   :  { %1863 = vmatprep.subr.bf16.mxu1 %v4242_v57  ;;  %v4318_v57 = vld [vmem:[#allocation6 + $0x140] ss:$36 sps:$4 sm:$0xff]  }
 0x1e1   :  { %1758 = vmatpush1.bf16.msra.mxu0 %v4237_v58  ;;  %v4319_v58 = vld [vmem:[#allocation6 + $0x3c8] ss:$36 sps:$4 sm:$0xff]  }
 0x1e2   :  { %1864 = vmatpush1.bf16.msra.mxu1 %v4240_v59  ;;  %1759 = vmatprep.subr.bf16.mxu0 %v4245_v60  ;;  %v4320_v59 = vld [vmem:[#allocation6 + $0x188] ss:$36 sps:$4 sm:$0xff]   ;;  %v4321_v60 = vld [vmem:[#allocation6 + $0x410] ss:$36 sps:$4 sm:$0xff]  }
 0x1e3   :  { %1865 = vmatprep.subr.bf16.mxu1 %v4248_v61  ;;  %v4322_v61 = vld [vmem:[#allocation6 + $0x1d0] ss:$36 sps:$4 sm:$0xff]  }
 0x1e5   :  { %1760 = vmatpush1.bf16.msra.mxu0 %v4243_v62  ;;  %v4323_v62 = vld [vmem:[#allocation6 + $0x458] ss:$36 sps:$4 sm:$0xff]  }
 0x1e6   :  { %1866 = vmatpush1.bf16.msra.mxu1 %v4246_v63  ;;  %1761 = vmatprep.subr.bf16.mxu0 %v4251_v3  ;;  %v4325_v63 = vld [vmem:[#allocation6 + $0x4a0] ss:$36 sps:$4 sm:$0xff]   ;;  %v4326_v3 = vld [vmem:[#allocation6 + $0x4e8] ss:$36 sps:$4 sm:$0xff]  }
 0x1e7   :  { %1867 = vmatprep.subr.bf16.mxu1 %v4254_v7  ;;  %v4327_v7 = vld [vmem:[#allocation6 + $0x530] ss:$36 sps:$4 sm:$0xff]  }
 0x1e9   :  { %1762 = vmatpush1.bf16.msra.mxu0 %v4249_v20  ;;  %v4328_v20 = vld [vmem:[#allocation6 + $0x578] ss:$36 sps:$4 sm:$0xff]  }
 0x1ea   :  { %1868 = vmatpush1.bf16.msra.mxu1 %v4252_v22  ;;  %1763 = vmatprep.subr.bf16.mxu0 %v4257_v0  ;;  %v4329_v22 = vld [vmem:[#allocation6 + $0x5c0] ss:$36 sps:$4 sm:$0xff]   ;;  %v4330_v0 = vld [vmem:[#allocation6 + $0x608] ss:$36 sps:$4 sm:$0xff]  }
 0x1eb   :  { %1869 = vmatprep.subr.bf16.mxu1 %v4260_v26 }
 0x1ed   :  { %1764 = vmatpush1.bf16.msra.mxu0 %v4255_v1 }
 0x1ee   :  { %1870 = vmatpush1.bf16.msra.mxu1 %v4258_v16  ;;  %1786 = vmatprep.subr.bf16.mxu0 %v4263_v2 }
 0x1ef   :  { %1892 = vmatprep.subr.bf16.mxu1 %v4266_v4 }
 0x1f0   :  { %1766 = vmatmul.mubr.bf16.vlgmr.msra.gmra.mrb[8].mxu0 %v4807_v15 }
 0x1f1   :  { %1872 = vmatmul.mubr.bf16.vlgmr.msra.gmra.mrb[8].mxu1 %v4807_v15  ;;  %1775 = vmatprep.mubr.bf16.mxu0 %v4819_v25 }
 0x1f2   :  { %1787 = vmatpush1.bf16.msra.mxu0 %v4261_v5  ;;  %1881 = vmatprep.mubr.bf16.mxu1 %v4819_v25 }
 0x1f3   :  { %1893 = vmatpush1.bf16.msra.mxu1 %v4264_v6  ;;  %1788 = vmatprep.subr.bf16.mxu0 %v4269_v27 }
 0x1f4   :  { %1894 = vmatprep.subr.bf16.mxu1 %v4272_v31 }
 0x1f6   :  { %1789 = vmatpush1.bf16.msra.mxu0 %v4267_v32 }
 0x1f7   :  { %1895 = vmatpush1.bf16.msra.mxu1 %v4270_v30  ;;  %1790 = vmatprep.subr.bf16.mxu0 %v4275_v19 }
 0x1f8   :  { %1776 = vmatmul.mubr.bf16.gmra.mrb[12].mxu0 %v4827_v41  ;;  %1896 = vmatprep.subr.bf16.mxu1 %v4278_v8 }
 0x1f9   :  { %1882 = vmatmul.mubr.bf16.gmra.mrb[12].mxu1 %v4827_v41  ;;  %1818 = vmatprep.mubr.bf16.mxu0 %v4615_v46 }
 0x1fa   :  { %1791 = vmatpush1.bf16.msra.mxu0 %v4273_v9  ;;  %1924 = vmatprep.mubr.bf16.mxu1 %v4615_v46 }
 0x1fb   :  { %1897 = vmatpush1.bf16.msra.mxu1 %v4276_v13  ;;  %1792 = vmatprep.subr.bf16.mxu0 %v4281_v14 }
 0x1fc   :  { %1898 = vmatprep.subr.bf16.mxu1 %v4284_v33 }
 0x1fe   :  { %1793 = vmatpush1.bf16.msra.mxu0 %v4279_v12 }
 0x1ff   :  { %1899 = vmatpush1.bf16.msra.mxu1 %v4282_v34  ;;  %1794 = vmatprep.subr.bf16.mxu0 %v4287_v11 }
 0x200   :  { %1900 = vmatprep.subr.bf16.mxu1 %v4290_v24 }
 0x202   :  { %1795 = vmatpush1.bf16.msra.mxu0 %v4285_v35 }
 0x203   :  { %1901 = vmatpush1.bf16.msra.mxu1 %v4288_v36  ;;  %1796 = vmatprep.subr.bf16.mxu0 %v4293_v37 }
 0x204   :  { %1902 = vmatprep.subr.bf16.mxu1 %v4296_v38 }
 0x206   :  { %1797 = vmatpush1.bf16.msra.mxu0 %v4291_v18 }
 0x207   :  { %1903 = vmatpush1.bf16.msra.mxu1 %v4294_v29  ;;  %1798 = vmatprep.subr.bf16.mxu0 %v4299_v39 }
 0x208   :  { %1904 = vmatprep.subr.bf16.mxu1 %v4302_v40 }
 0x20a   :  { %1799 = vmatpush1.bf16.msra.mxu0 %v4297_v42 }
 0x20b   :  { %1905 = vmatpush1.bf16.msra.mxu1 %v4300_v43  ;;  %1800 = vmatprep.subr.bf16.mxu0 %v4305_v28 }
 0x20c   :  { %1906 = vmatprep.subr.bf16.mxu1 %v4308_v44 }
 0x20e   :  { %1801 = vmatpush1.bf16.msra.mxu0 %v4303_v17 }
 0x20f   :  { %1907 = vmatpush1.bf16.msra.mxu1 %v4306_v45  ;;  %3745 = vmatprep.subr.bf16.mxu0 %v4309_v47 }
 0x210   :  { %3865 = vmatprep.subr.bf16.mxu1 %v4616_v50 }
 0x211   :  { %1819 = vmatmul.mubr.bf16.vlgmr.msra.gmra.mrb[8].mxu0 %v4837_v21 }
 0x212   :  { %1925 = vmatmul.mubr.bf16.vlgmr.msra.gmra.mrb[8].mxu1 %v4837_v21  ;;  %3746 = vmatpush3.bf16.msra.mxu0 %v4310_v48 }
 0x213   :  { %3747 = vmatprep.subr.bf16.mxu0 %v4311_v49  ;;  %1828 = vmatprep.mubr.bf16.mxu0 %v4615_v46 }
 0x214   :  { %1934 = vmatprep.mubr.bf16.mxu1 %v4615_v46 }
 0x216   :  { %3748 = vmatpush3.bf16.msra.mxu0 %v4312_v51 }
 0x217   :  { %3749 = vmatprep.subr.bf16.mxu0 %v4313_v52 }
 0x219   :  { %1829 = vmatmul.mubr.bf16.gmra.mrb[12].mxu0 %v4847_v23 }
 0x21a   :  { %1935 = vmatmul.mubr.bf16.gmra.mrb[12].mxu1 %v4847_v23  ;;  %3750 = vmatpush3.bf16.msra.mxu0 %v4314_v53 }
 0x21b   :  { %1977 = vmatprep.mubr.bf16.mxu0 %v4805_v10  ;;  %3751 = vmatprep.subr.bf16.mxu0 %v4315_v54  ;;  %v4324_v10 = vld [vmem:[#allocation6 + $0x218] ss:$36 sps:$4 sm:$0xff]  }
 0x21c   :  { %3867 = vmatprep.mubr.msk.bf16.mxu1 %vm4617_vm0, %v4616_v50 }
 0x21e   :  { %3752 = vmatpush3.bf16.msra.mxu0 %v4316_v55 }
 0x21f   :  { %3753 = vmatprep.subr.bf16.mxu0 %v4317_v56 }
 0x222   :  { %3754 = vmatpush3.bf16.msra.mxu0 %v4318_v57 }
 0x223   :  { %3755 = vmatprep.subr.bf16.mxu0 %v4319_v58 }
 0x226   :  { %3756 = vmatpush3.bf16.msra.mxu0 %v4320_v59 }
 0x227   :  { %3757 = vmatprep.subr.bf16.mxu0 %v4321_v60 }
 0x22a   :  { %3758 = vmatpush3.bf16.msra.mxu0 %v4322_v61 }
 0x22b   :  { %3759 = vmatprep.subr.bf16.mxu0 %v4323_v62 }
 0x22e   :  { %3760 = vmatpush3.bf16.msra.mxu0 %v4324_v10 }
 0x22f   :  { %3845 = vmatprep.subr.bf16.mxu0 %v4325_v63 }
 0x231   :  { %1978 = vmatmul.mubr.bf16.vlgmr.msra.gmra.mrb[16].mxu0 %v4807_v15  ;;  %v4331_v15 = vld [vmem:[#allocation6 + $0x650] ss:$36 sps:$4 sm:$0xff]  }
 0x232   :  { %1985 = vmatprep.mubr.bf16.mxu0 %v4819_v25  ;;  %3846 = vmatpush3.bf16.msra.mxu0 %v4325_v63  ;;  %v4332_v25 = vld [vmem:[#allocation6 + $0x698] ss:$36 sps:$4 sm:$0xff]  }
 0x233   :  { %3847 = vmatprep.subr.bf16.mxu0 %v4326_v3 }
 0x236   :  { %3848 = vmatpush3.bf16.msra.mxu0 %v4326_v3 }
 0x237   :  { %3849 = vmatprep.subr.bf16.mxu0 %v4327_v7 }
 0x239   :  { %1986 = vmatmul.mubr.bf16.gmra.mrb[20].mxu0 %v4827_v41 }
 0x23a   :  { %3850 = vmatpush3.bf16.msra.mxu0 %v4327_v7  ;;  %3861 = vmatprep.mubr.bf16.mxu0 %v4837_v21 }
 0x23b   :  { %3851 = vmatprep.subr.bf16.mxu0 %v4328_v20 }
 0x23e   :  { %3852 = vmatpush3.bf16.msra.mxu0 %v4328_v20 }
 0x23f   :  { %3853 = vmatprep.subr.bf16.mxu0 %v4329_v22 }
 0x242   :  { %3854 = vmatpush3.bf16.msra.mxu0 %v4329_v22 }
 0x243   :  { %3855 = vmatprep.subr.bf16.mxu0 %v4330_v0 }
 0x246   :  { %3856 = vmatpush3.bf16.msra.mxu0 %v4330_v0 }
 0x247   :  { %3857 = vmatprep.subr.bf16.mxu0 %v4331_v15 }
 0x24a   :  { %3858 = vmatpush3.bf16.msra.mxu0 %v4331_v15 }
 0x24b   :  { %3859 = vmatprep.subr.bf16.mxu0 %v4332_v25 }
 0x24e   :  { %3860 = vmatpush3.bf16.msra.mxu0 %v4332_v25 }
 0x24f   :  { %3883 = vmatprep.subr.bf16.mxu0 %v4616_v50 }
 0x251   :  { %3862 = vmatmul.mubr.bf16.vlgmr.msra.gmra.mrb[24].mxu0 %v4847_v23 }
 0x252   :  { %3885 = vmatprep.mubr.msk.bf16.mxu0 %vm4617_vm0, %v4616_v50 }
 0x283   :  { %v1608_v41 = vpop.f32.mrb[0].mxu0  ;;  %v4879_v21 = vpop.f32.mrb[0].mxu1 }
 0x284   :  { %v4881_v26 = vpop.f32.mrb[1].mxu0  ;;  %v1716_v1 = vpop.f32.mrb[1].mxu1 }
 0x285   :  { %v1612_v16 = vpop.f32.mrb[2].mxu0  ;;  %v4883_v2 = vpop.f32.mrb[2].mxu1 }
 0x286   :  { %v2045_v4 = vpack.c.bf16 %v1612_v16, %v1608_v41  ;;  %v2502_v5 = vpack.c.bf16 %v4883_v2, %v4879_v21  ;;  %v4887_v6 = vpop.f32.mrb[3].mxu0  ;;  %v1720_v27 = vpop.f32.mrb[3].mxu1 }
 0x287   :  { %v2274_v23 = vpack.c.bf16 %v4887_v6, %v4881_v26  ;;  %v2047_v31 = vpack.c.bf16 %v1720_v27, %v1716_v1 }
 0x289   :  { %3866 = vmatpush3.bf16.xpose.msra.mxu1 %v2047_v31 }
 0x28a   :  { %3871 = vmatprep.subr.bf16.mxu1 %v4616_v50 }
 0x28b   :  { %v1618_v32 = vpop.f32.mrb[4].mxu0  ;;  %v4892_v30 = vpop.f32.mrb[4].mxu1 }
 0x28c   :  { %v4894_v19 = vpop.f32.mrb[5].mxu0  ;;  %v1726_v8 = vpop.f32.mrb[5].mxu1 }
 0x28d   :  { %v1622_v9 = vpop.f32.mrb[6].mxu0  ;;  %v4896_v13 = vpop.f32.mrb[6].mxu1 }
 0x28e   :  { %v2046_v14 = vpack.c.bf16 %v1622_v9, %v1618_v32  ;;  %v2503_v33 = vpack.c.bf16 %v4896_v13, %v4892_v30  ;;  %v4900_v12 = vpop.f32.mrb[7].mxu0  ;;  %v1730_v34 = vpop.f32.mrb[7].mxu1  ;;  %v4959_v9 = vld [vmem:[#allocation9] sm:$0xff] }
 0x28f   :  { %v2275_v11 = vpack.c.bf16 %v4900_v12, %v4894_v19  ;;  %v2048_v24 = vpack.c.bf16 %v1730_v34, %v1726_v8  ;;  %v4961_v34 = vld [vmem:[#allocation9 + $0x8] sm:$0xff] }
 0x290   :  { %3868 = vmatmul.mubr.bf16.vlgmr.msra.gmra.mrb[16].mxu1 %v2045_v4 }
 0x291   :  { %3872 = vmatpush3.bf16.xpose.msra.mxu1 %v2048_v24  ;;  %3873 = vmatprep.mubr.msk.bf16.mxu1 %vm4617_vm0, %v4616_v50 }
 0x292   :  { %3877 = vmatprep.subr.bf16.mxu1 %v4616_v50 }
 0x298   :  { %3874 = vmatmul.mubr.bf16.vlgmr.msra.gmra.mrb[20].mxu1 %v2046_v14 }
 0x299   :  { %3879 = vmatprep.mubr.msk.bf16.mxu1 %vm4617_vm0, %v4616_v50 }
 0x2e4   :  { %v4909_v35 = vpop.f32.mrb[8].mxu0 }
 0x2e5   :  { %v1926_v36 = vpop.f32.mrb[8].mxu1  ;;  %v4911_v37 = vpop.f32.mrb[9].mxu0 }
 0x2e6   :  { %v4913_v38 = vpop.f32.mrb[9].mxu1  ;;  %v4915_v18 = vpop.f32.mrb[10].mxu0 }
 0x2e7   :  { %v2276_v29 = vpack.c.bf16 %v4915_v18, %v4909_v35  ;;  %v1930_v39 = vpop.f32.mrb[10].mxu1  ;;  %v4919_v40 = vpop.f32.mrb[11].mxu0 }
 0x2e8   :  { %v2049_v42 = vpack.c.bf16 %v1930_v39, %v1926_v36  ;;  %v2504_v43 = vpack.c.bf16 %v4919_v40, %v4911_v37  ;;  %v4923_v28 = vpop.f32.mrb[11].mxu1 }
 0x2e9   :  { %v2278_v44 = vpack.c.bf16 %v4923_v28, %v4913_v38 }
 0x2ea   :  { %3878 = vmatpush3.bf16.msra.mxu1 %v2049_v42 }
 0x2eb   :  { %3889 = vmatprep.subr.bf16.mxu1 %v4616_v50 }
 0x2ec   :  { %v4928_v17 = vpop.f32.mrb[12].mxu0 }
 0x2ed   :  { %v1936_v45 = vpop.f32.mrb[12].mxu1  ;;  %v4930_v47 = vpop.f32.mrb[13].mxu0 }
 0x2ee   :  { %v4932_v48 = vpop.f32.mrb[13].mxu1  ;;  %v4934_v49 = vpop.f32.mrb[14].mxu0 }
 0x2ef   :  { %v2277_v51 = vpack.c.bf16 %v4934_v49, %v4928_v17  ;;  %v1940_v52 = vpop.f32.mrb[14].mxu1  ;;  %v4938_v53 = vpop.f32.mrb[15].mxu0 }
 0x2f0   :  { %v2050_v54 = vpack.c.bf16 %v1940_v52, %v1936_v45  ;;  %v2505_v55 = vpack.c.bf16 %v4938_v53, %v4930_v47  ;;  %v4942_v56 = vpop.f32.mrb[15].mxu1 }
 0x2f1   :  { %v2279_v57 = vpack.c.bf16 %v4942_v56, %v4932_v48 }
 0x2f2   :  { %3884 = vmatpush3.bf16.msra.mxu0 %v2050_v54 }
 0x2f3   :  { %3895 = vmatprep.subr.bf16.mxu0 %v4616_v50 }
 0x304   :  { %v3761_v58 = vpop.f32.mrb[16].mxu0 }
 0x305   :  { %v3762_v59 = vpop.f32.mrb[17].mxu0 }
 0x306   :  { %v3763_v60 = vadd.f32 %v3762_v59, %v3761_v58  ;;  %v3764_v61 = vpop.f32.mrb[18].mxu0 }
 0x307   :  { %v3765_v62 = vpop.f32.mrb[19].mxu0 }
 0x308   :  { %v3766_v10 = vadd.f32 %v3765_v62, %v3764_v61 }
 0x30c   :  { %v3767_v63 = vpop.f32.mrb[20].mxu0 }
 0x30d   :  { %v3768_v3 = vpop.f32.mrb[21].mxu0 }
 0x30e   :  { %v3769_v7 = vadd.f32 %v3768_v3, %v3767_v63  ;;  %v3770_v20 = vpop.f32.mrb[22].mxu0 }
 0x30f   :  { %v3771_v22 = vpop.f32.mrb[23].mxu0 }
 0x310   :  { %v3772_v0 = vadd.f32 %v3771_v22, %v3770_v20 }
 0x324   :  { %v3863_v15 = vpop.f32.mrb[24].mxu0 }
 0x325   :  { %v4947_v25 = vadd.f32 %v3863_v15, %v3769_v7  ;;  %v2028_v41 = vpop.f32.mrb[25].mxu0 }
 0x326   :  { %v4949_v1 = vadd.f32 %v3763_v60, %v2028_v41  ;;  %v3864_v16 = vpop.f32.mrb[26].mxu0 }
 0x327   :  { %v4951_v4 = vadd.f32 %v3864_v16, %v3772_v0  ;;  %v2031_v27 = vpop.f32.mrb[27].mxu0 }
 0x328   :  { %v4953_v31 = vadd.f32 %v3766_v10, %v2031_v27 }
 0x329   :  { %v2507_v32 = vpack.c.bf16 %v4951_v4, %v4947_v25 }
 0x32a   :  { %v2506_v8 = vpack.c.bf16 %v4953_v31, %v4949_v1 }
 0x363   :  { %v2085_v14 = vpop.f32.mrb[16].mxu1 }
 0x364   :  { %v2086_v24 = vadd.f32 %v2085_v14, %v4959_v9  ;;  %v3869_v36 = vpop.f32.mrb[17].mxu1 }
 0x365   :  { %v2088_v39 = vpop.f32.mrb[18].mxu1 }
 0x366   :  { %v2089_v42 = vadd.f32 %v2088_v39, %v4961_v34  ;;  %v3870_v45 = vpop.f32.mrb[19].mxu1  ;;  %v2134_v52 = vsel %vm2133_vm1, %v2086_v24, -inf }
 0x367   :  { %2135 = vmax.xlane.f32.xlu0 %v2134_v52 }
 0x368   :  { %v2137_v54 = vsel %vm2133_vm1, %v2089_v42, -inf }
 0x369   :  { %2138 = vmax.xlane.f32.xlu1 %v2137_v54 }
 0x36b   :  { %v2126_v58 = vpop.f32.mrb[20].mxu1 }
 0x36c   :  { %v2127_v59 = vadd.f32 %v2126_v58, %v4959_v9  ;;  %v3875_v60 = vpop.f32.mrb[21].mxu1 }
 0x36d   :  { %v2129_v61 = vpop.f32.mrb[22].mxu1 }
 0x36e   :  { %v2130_v62 = vadd.f32 %v2129_v61, %v4961_v34  ;;  %v3876_v10 = vpop.f32.mrb[23].mxu1  ;;  %v2140_v63 = vsel %vm2133_vm1, %v2127_v59, -inf }
 0x36f   :  { %2141 = vmax.xlane.f32.xlu0 %v2140_v63 }
 0x370   :  { %v2143_v3 = vsel %vm2133_vm1, %v2130_v62, -inf }
 0x371   :  { %2144 = vmax.xlane.f32.xlu1 %v2143_v3 }
 0x3f4   :  { %v2136_v7 = vpop.xlane.xlu0 %2135 }
 0x3f5   :  { %v2146_v22 = vsub.f32 %v2086_v24, %v2136_v7 }
 0x3f6   :  { %v2139_v20 = vpop.xlane.xlu1 %2138 }
 0x3f7   :  { %v2147_v0 = vsub.f32 %v2089_v42, %v2139_v20 }
 0x3f9   :  { %v2150_v15 = vpack.c.bf16 %v2147_v0, %v2146_v22 }
 0x3fb   :  { %v2153_v41 = vmul.bf16 1069105081, %v2150_v15 }
 0x3fc   :  { %v2142_v16 = vpop.xlane.xlu0 %2141 }
 0x3fd   :  { %4437 = vpow.bf16 %v2153_v41  ;;  %v2148_v14 = vsub.f32 %v2127_v59, %v2142_v16 }
 0x3fe   :  { %v2145_v27 = vpop.xlane.xlu1 %2144 }
 0x3ff   :  { %v2149_v36 = vsub.f32 %v2130_v62, %v2145_v27 }
 0x401   :  { %v2151_v39 = vpack.c.bf16 %v2149_v36, %v2148_v14 }
 0x403   :  { %v2156_v45 = vmul.bf16 1069105081, %v2151_v39 }
 0x405   :  { %4439 = vpow.bf16 %v2156_v45 }
 0x408   :  { %v4971_v52 = vpop.eup %4437 }
 0x409   :  { %3880 = vmatmul.mubr.msk.bf16.vlgmr.msra.gmra.mrb[24].mxu1 %vm2133_vm1, %v4971_v52 }
 0x40a   :  { %3890 = vmatpush3.bf16.xpose.msra.mxu1 %v2276_v29  ;;  %3891 = vmatprep.mubr.msk.bf16.mxu1 %vm4617_vm0, %v4616_v50 }
 0x40b   :  { %3901 = vmatprep.subr.bf16.mxu1 %v4616_v50 }
 0x410   :  { %v4981_v24 = vpop.eup %4439 }
 0x411   :  { %3886 = vmatmul.mubr.msk.bf16.vlgmr.msra.gmra.mrb[28].mxu0 %vm2133_vm1, %v4981_v24  ;;  %3892 = vmatmul.mubr.bf16.vlgmr.msra.gmra.mrb[28].mxu1 %v2274_v23 }
 0x412   :  { %3896 = vmatpush3.bf16.xpose.msra.mxu0 %v2277_v51  ;;  %3902 = vmatpush3.bf16.msra.mxu1 %v2278_v44 }
 0x413   :  { %3897 = vmatprep.mubr.msk.bf16.mxu0 %vm4617_vm0, %v4616_v50  ;;  %3907 = vmatprep.subr.bf16.mxu0 %v4616_v50 }
 0x414   :  { %3903 = vmatprep.mubr.msk.bf16.mxu1 %vm4617_vm0, %v4616_v50  ;;  %3913 = vmatprep.subr.bf16.mxu1 %v4616_v50 }
 0x419   :  { %3898 = vmatmul.mubr.bf16.vlgmr.msra.gmra.mrb[32].mxu0 %v2275_v11 }
 0x41a   :  { %3908 = vmatpush3.bf16.msra.mxu0 %v2279_v57  ;;  %3909 = vmatprep.mubr.msk.bf16.mxu0 %vm4617_vm0, %v4616_v50 }
 0x41b   :  { %3919 = vmatprep.subr.bf16.mxu0 %v4616_v50 }
 0x4dc   :  { %v5009_v26 = vpop.f32.mrb[24].mxu1 }
 0x4dd   :  { %v3881_v6 = vpop.f32.mrb[25].mxu1 }
 0x4de   :  { %v5011_v23 = vpop.f32.mrb[26].mxu1 }
 0x4df   :  { %v3882_v35 = vpop.f32.mrb[27].mxu1 }
 0x4e4   :  { %v5013_v38 = vpop.f32.mrb[28].mxu0  ;;  %v2314_v18 = vpop.f32.mrb[28].mxu1 }
 0x4e5   :  { %v2315_v19 = vadd.f32 %v2314_v18, %v4959_v9  ;;  %v3887_v12 = vpop.f32.mrb[29].mxu0  ;;  %v3893_v11 = vpop.f32.mrb[29].mxu1 }
 0x4e6   :  { %v5016_v29 = vpop.f32.mrb[30].mxu0  ;;  %v2317_v28 = vpop.f32.mrb[30].mxu1 }
 0x4e7   :  { %v2318_v44 = vadd.f32 %v2317_v28, %v4961_v34  ;;  %v3888_v17 = vpop.f32.mrb[31].mxu0  ;;  %v3894_v48 = vpop.f32.mrb[31].mxu1  ;;  %v2362_v49 = vsel %vm2133_vm1, %v2315_v19, -inf  ;;  %v2158_v28 = vunpack.c.l.bf16 %v4971_v52 }
 0x4e8   :  { %2363 = vmax.xlane.f32.xlu0 %v2362_v49 }
 0x4e9   :  { %v2365_v51 = vsel %vm2133_vm1, %v2318_v44, -inf }
 0x4ea   :  { %2366 = vmax.xlane.f32.xlu1 %v2365_v51 }
 0x4ec   :  { %v2355_v56 = vpop.f32.mrb[32].mxu0 }
 0x4ed   :  { %v2356_v57 = vadd.f32 %v2355_v56, %v4959_v9  ;;  %v3899_v42 = vpop.f32.mrb[33].mxu0  ;;  %v2160_v56 = vunpack.c.l.bf16 %v4981_v24 }
 0x4ee   :  { %v2358_v54 = vpop.f32.mrb[34].mxu0  ;;  %v2161_v42 = vunpack.c.h.bf16 %v4981_v24 }
 0x4ef   :  { %v2359_v58 = vadd.f32 %v2358_v54, %v4961_v34  ;;  %v3900_v59 = vpop.f32.mrb[35].mxu0  ;;  %v2368_v60 = vsel %vm2133_vm1, %v2356_v57, -inf }
 0x4f0   :  { %2369 = vmax.xlane.f32.xlu0 %v2368_v60  ;;  %v2171_v54 = vsel %vm2133_vm1, %v2161_v42, 0.0  ;;  %v4342_v59 = vld [vmem:[#allocation8 + $0xc8] ss:$12 sps:$4 sm:$0xff]  }
 0x4f1   :  { %v2371_v61 = vsel %vm2133_vm1, %v2359_v58, -inf }
 0x4f2   :  { %2372 = vmax.xlane.f32.xlu1 %v2371_v61 }
 0x575   :  { %v2364_v62 = vpop.xlane.xlu0 %2363 }
 0x576   :  { %v2374_v63 = vsub.f32 %v2315_v19, %v2364_v62 }
 0x577   :  { %v2367_v10 = vpop.xlane.xlu1 %2366 }
 0x578   :  { %v2375_v3 = vsub.f32 %v2318_v44, %v2367_v10  ;;  %v2159_v44 = vunpack.c.h.bf16 %v4971_v52  ;;  %v2168_v52 = vsel %vm2133_vm1, %v2160_v56, 0.0  ;;  %v4351_v56 = vld [vmem:[#allocation8 + $0x64] ss:$12 sps:$4 sm:$0xff]  }
 0x57a   :  { %v2378_v7 = vpack.c.bf16 %v2375_v3, %v2374_v63  ;;  %v2165_v48 = vsel %vm2133_vm1, %v2159_v44, 0.0  ;;  %v4347_v44 = vld [vmem:[#allocation8 + $0xe0] ss:$12 sps:$4 sm:$0xff]  }
 0x57c   :  { %v2381_v20 = vmul.bf16 1069105081, %v2378_v7 }
 0x57d   :  { %v2370_v22 = vpop.xlane.xlu0 %2369 }
 0x57e   :  { %4441 = vpow.bf16 %v2381_v20  ;;  %v2376_v15 = vsub.f32 %v2356_v57, %v2370_v22 }
 0x57f   :  { %v2373_v0 = vpop.xlane.xlu1 %2372 }
 0x580   :  { %v2377_v41 = vsub.f32 %v2359_v58, %v2373_v0  ;;  %v4335_v58 = vld [vmem:[#allocation8 + $0x4] ss:$12 sps:$4 sm:$0xff]  }
 0x582   :  { %v2379_v16 = vpack.c.bf16 %v2377_v41, %v2376_v15 }
 0x584   :  { %v2384_v27 = vmul.bf16 1069105081, %v2379_v16 }
 0x586   :  { %4443 = vpow.bf16 %v2384_v27 }
 0x589   :  { %v4442_v14 = vpop.eup %4441 }
 0x58a   :  { %3904 = vmatmul.mubr.msk.bf16.vlgmr.msra.gmra.mrb[32].mxu1 %vm2133_vm1, %v4442_v14  ;;  %v2386_v18 = vunpack.c.l.bf16 %v4442_v14  ;;  %v2387_v12 = vunpack.c.h.bf16 %v4442_v14 }
 0x58b   :  { %3914 = vmatpush3.bf16.xpose.msra.mxu1 %v2504_v43  ;;  %3915 = vmatprep.mubr.msk.bf16.mxu1 %vm4617_vm0, %v4616_v50 }
 0x58c   :  { %3925 = vmatprep.subr.bf16.mxu1 %v4616_v50  ;;  %v2390_v11 = vsel %vm2133_vm1, %v2386_v18, 0.0 }
 0x591   :  { %v4444_v36 = vpop.eup %4443 }
 0x592   :  { %3910 = vmatmul.mubr.msk.bf16.vlgmr.msra.gmra.mrb[36].mxu0 %vm2133_vm1, %v4444_v36  ;;  %3916 = vmatmul.mubr.bf16.vlgmr.msra.gmra.mrb[36].mxu1 %v2502_v5  ;;  %v2388_v17 = vunpack.c.l.bf16 %v4444_v36  ;;  %v2389_v49 = vunpack.c.h.bf16 %v4444_v36  ;;  %v4333_v36 = vld [vmem:[#allocation8] ss:$12 sps:$4 sm:$0xff]  }
 0x593   :  { %3920 = vmatpush3.bf16.xpose.msra.mxu0 %v2505_v55  ;;  %3926 = vmatpush3.bf16.msra.mxu1 %v2506_v8 }
 0x594   :  { %3921 = vmatprep.mubr.msk.bf16.mxu0 %vm4617_vm0, %v4616_v50  ;;  %3931 = vmatprep.subr.bf16.mxu0 %v4616_v50  ;;  %v2396_v51 = vsel %vm2133_vm1, %v2388_v17, 0.0  ;;  %v2399_v57 = vsel %vm2133_vm1, %v2389_v49, 0.0  ;;  %v4348_v17 = vld [vmem:[#allocation8 + $0x20] ss:$12 sps:$4 sm:$0xff]  }
 0x595   :  { %3927 = vmatprep.mubr.msk.bf16.mxu1 %vm4617_vm0, %v4616_v50  ;;  %3216 = vmatprep.subr.bf16.mxu1 %v4335_v58 }
 0x59a   :  { %3922 = vmatmul.mubr.bf16.vlgmr.msra.gmra.mrb[40].mxu0 %v2503_v33 }
 0x59b   :  { %3932 = vmatpush3.bf16.msra.mxu0 %v2507_v32  ;;  %3933 = vmatprep.mubr.msk.bf16.mxu0 %vm4617_vm0, %v4616_v50 }
 0x59c   :  { %3807 = vmatprep.subr.bf16.mxu0 %v4342_v59 }
 0x65d   :  { %v5055_v21 = vpop.f32.mrb[32].mxu1 }
 0x65e   :  { %v3905_v2 = vpop.f32.mrb[33].mxu1 }
 0x65f   :  { %v5057_v5 = vpop.f32.mrb[34].mxu1  ;;  %v4338_v2 = vld [vmem:[#allocation8 + $0x1c] ss:$12 sps:$4 sm:$0xff]  }
 0x660   :  { %v3906_v37 = vpop.f32.mrb[35].mxu1 }
 0x665   :  { %v5059_v40 = vpop.f32.mrb[36].mxu0  ;;  %v2542_v43 = vpop.f32.mrb[36].mxu1 }
 0x666   :  { %v2543_v47 = vadd.f32 %v2542_v43, %v4959_v9  ;;  %v3911_v30 = vpop.f32.mrb[37].mxu0  ;;  %v3917_v13 = vpop.f32.mrb[37].mxu1 }
 0x667   :  { %v5062_v33 = vpop.f32.mrb[38].mxu0  ;;  %v2545_v53 = vpop.f32.mrb[38].mxu1 }
 0x668   :  { %v2546_v55 = vadd.f32 %v2545_v53, %v4961_v34  ;;  %v3912_v25 = vpop.f32.mrb[39].mxu0  ;;  %v3918_v50 = vpop.f32.mrb[39].mxu1  ;;  %v2590_v1 = vsel %vm2133_vm1, %v2543_v47, -inf  ;;  %v4336_v53 = vld [vmem:[#allocation8 + $0x18] ss:$12 sps:$4 sm:$0xff]  }
 0x669   :  { %2591 = vmax.xlane.f32.xlu0 %v2590_v1  ;;  %v4341_v1 = vld [vmem:[#allocation8 + $0x34] ss:$12 sps:$4 sm:$0xff]  }
 0x66a   :  { %v2593_v4 = vsel %vm2133_vm1, %v2546_v55, -inf }
 0x66b   :  { %2594 = vmax.xlane.f32.xlu1 %v2593_v4 }
 0x66d   :  { %v2583_v31 = vpop.f32.mrb[40].mxu0 }
 0x66e   :  { %v2584_v32 = vadd.f32 %v2583_v31, %v4959_v9  ;;  %v3923_v8 = vpop.f32.mrb[41].mxu0  ;;  %v2393_v9 = vsel %vm2133_vm1, %v2387_v12, 0.0 }
 0x66f   :  { %v2586_v39 = vpop.f32.mrb[42].mxu0  ;;  %v4339_v8 = vld [vmem:[#allocation8 + $0x30] ss:$12 sps:$4 sm:$0xff]  }
 0x670   :  { %v2587_v45 = vadd.f32 %v2586_v39, %v4961_v34  ;;  %v3924_v6 = vpop.f32.mrb[43].mxu0  ;;  %v2596_v35 = vsel %vm2133_vm1, %v2584_v32, -inf  ;;  %v2162_v34 = vsel %vm2133_vm1, %v2158_v28, 0.0  ;;  %v4343_v39 = vld [vmem:[#allocation8 + $0x8] ss:$12 sps:$4 sm:$0xff]  }
 0x671   :  { %2597 = vmax.xlane.f32.xlu0 %v2596_v35 }
 0x672   :  { %v2599_v19 = vsel %vm2133_vm1, %v2587_v45, -inf }
 0x673   :  { %2600 = vmax.xlane.f32.xlu1 %v2599_v19 }
 0x675   :  { %2391 = vadd.xlane.f32.xlu0 %v2390_v11 }
 0x677   :  { %2394 = vadd.xlane.f32.xlu1 %v2393_v9  ;;  %v4346_v9 = vld [vmem:[#allocation8 + $0x4c] ss:$12 sps:$4 sm:$0xff]  }
 0x679   :  { %2163 = vadd.xlane.f32.xlu0 %v2162_v34  ;;  %v4344_v34 = vld [vmem:[#allocation8 + $0x48] ss:$12 sps:$4 sm:$0xff]  }
 0x67b   :  { %2166 = vadd.xlane.f32.xlu1 %v2165_v48 }
 0x67d   :  { %2397 = vadd.xlane.f32.xlu0 %v2396_v51 }
 0x67f   :  { %2400 = vadd.xlane.f32.xlu1 %v2399_v57  ;;  %v4352_v57 = vld [vmem:[#allocation8 + $0xf8] ss:$12 sps:$4 sm:$0xff]  }
 0x681   :  { %2169 = vadd.xlane.f32.xlu0 %v2168_v52 }
 0x683   :  { %2172 = vadd.xlane.f32.xlu1 %v2171_v54 }
 0x6f6   :  { %v2592_v60 = vpop.xlane.xlu0 %2591 }
 0x6f7   :  { %v2602_v62 = vsub.f32 %v2543_v47, %v2592_v60  ;;  %v4356_v60 = vld [vmem:[#allocation8 + $0x7c] ss:$12 sps:$4 sm:$0xff]  }
 0x6f8   :  { %v2595_v61 = vpop.xlane.xlu1 %2594 }
 0x6f9   :  { %v2603_v10 = vsub.f32 %v2546_v55, %v2595_v61  ;;  %v4357_v61 = vld [vmem:[#allocation8 + $0x110] ss:$12 sps:$4 sm:$0xff]  }
 0x6fb   :  { %v2606_v63 = vpack.c.bf16 %v2603_v10, %v2602_v62 }
 0x6fd   :  { %v2609_v3 = vmul.bf16 1069105081, %v2606_v63  ;;  %v4354_v63 = vld [vmem:[#allocation8 + $0x78] ss:$12 sps:$4 sm:$0xff]  }
 0x6fe   :  { %v2598_v7 = vpop.xlane.xlu0 %2597 }
 0x6ff   :  { %4445 = vpow.bf16 %v2609_v3  ;;  %v2604_v20 = vsub.f32 %v2584_v32, %v2598_v7  ;;  %v4358_v3 = vld [vmem:[#allocation8 + $0x50] ss:$12 sps:$4 sm:$0xff]  }
 0x700   :  { %v2601_v24 = vpop.xlane.xlu1 %2600 }
 0x701   :  { %v2605_v22 = vsub.f32 %v2587_v45, %v2601_v24 }
 0x702   :  { %v2392_v0 = vpop.xlane.xlu0 %2391 }
 0x703   :  { %v2607_v15 = vpack.c.bf16 %v2605_v22, %v2604_v20  ;;  %4447 = vrcp.f32 %v2392_v0  ;;  %v4359_v22 = vld [vmem:[#allocation8 + $0x90] ss:$12 sps:$4 sm:$0xff]   ;;  %v4363_v0 = vld [vmem:[#allocation8 + $0x68] ss:$12 sps:$4 sm:$0xff]  }
 0x704   :  { %v2395_v41 = vpop.xlane.xlu1 %2394 }
 0x705   :  { %v2612_v16 = vmul.bf16 1069105081, %v2607_v15  ;;  %4449 = vrcp.f32 %v2395_v41  ;;  %v4366_v15 = vld [vmem:[#allocation8 + $0xac] ss:$12 sps:$4 sm:$0xff]  }
 0x706   :  { %v2164_v27 = vpop.xlane.xlu0 %2163  ;;  %v4367_v41 = vld [vmem:[#allocation8 + $0x140] ss:$12 sps:$4 sm:$0xff]  }
 0x707   :  { %4451 = vpow.bf16 %v2612_v16  ;;  %v4364_v16 = vld [vmem:[#allocation8 + $0xa8] ss:$12 sps:$4 sm:$0xff]  }
 0x708   :  { %4453 = vrcp.f32 %v2164_v27  ;;  %v2167_v14 = vpop.xlane.xlu1 %2166  ;;  %v4372_v27 = vld [vmem:[#allocation8 + $0x158] ss:$12 sps:$4 sm:$0xff]  }
 0x709   :  { %4455 = vrcp.f32 %v2167_v14  ;;  %v4369_v14 = vld [vmem:[#allocation8 + $0xc0] ss:$12 sps:$4 sm:$0xff]  }
 0x70a   :  { %v4446_v37 = vpop.eup %4445  ;;  %v2398_v43 = vpop.xlane.xlu0 %2397 }
 0x70b   :  { %4457 = vrcp.f32 %v2398_v43  ;;  %3928 = vmatmul.mubr.msk.bf16.vlgmr.msra.gmra.mrb[40].mxu1 %vm2133_vm1, %v4446_v37  ;;  %v2614_v47 = vunpack.c.l.bf16 %v4446_v37  ;;  %v2615_v30 = vunpack.c.h.bf16 %v4446_v37  ;;  %v4377_v37 = vld [vmem:[#allocation8 + $0x170] ss:$12 sps:$4 sm:$0xff]   ;;  %v4374_v43 = vld [vmem:[#allocation8 + $0xd8] ss:$12 sps:$4 sm:$0xff]  }
 0x70c   :  { %3217 = vmatpush1.bf16.msra.mxu1 %v4333_v36  ;;  %v2401_v13 = vpop.xlane.xlu1 %2400  ;;  %v4373_v36 = vld [vmem:[#allocation8 + $0x98] ss:$12 sps:$4 sm:$0xff]  }
 0x70d   :  { %v4448_v55 = vpop.eup %4447  ;;  %4459 = vrcp.f32 %v2401_v13  ;;  %v2618_v25 = vsel %vm2133_vm1, %v2614_v47, 0.0  ;;  %v2621_v50 = vsel %vm2133_vm1, %v2615_v30, 0.0  ;;  %3218 = vmatprep.subr.bf16.mxu1 %v4338_v2  ;;  %v4376_v2 = vld [vmem:[#allocation8 + $0xdc] ss:$12 sps:$4 sm:$0xff]   ;;  %v4381_v30 = vld [vmem:[#allocation8 + $0xf4] ss:$12 sps:$4 sm:$0xff]  }
 0x70e   :  { %2619 = vadd.xlane.f32.xlu0 %v2618_v25  ;;  %v2170_v4 = vpop.xlane.xlu0 %2169  ;;  %2622 = vadd.xlane.f32.xlu1 %v2621_v50  ;;  %v2494_v45 = vmul.f32 %v4448_v55, %v5055_v21  ;;  %v4378_v47 = vld [vmem:[#allocation8 + $0xb0] ss:$12 sps:$4 sm:$0xff]   ;;  %v4406_v13 = vld [vmem:[#allocation8 + $0x188] ss:$12 sps:$4 sm:$0xff]   ;;  %v4384_v55 = vld [vmem:[#allocation8 + $0x10c] ss:$12 sps:$4 sm:$0xff]  }
 0x70f   :  { %v4450_v31 = vpop.eup %4449  ;;  %4461 = vrcp.f32 %v2170_v4  ;;  %v4410_v25 = vld [vmem:[#allocation8 + $0x1a0] ss:$12 sps:$4 sm:$0xff]   ;;  %v4382_v50 = vld [vmem:[#allocation8 + $0x108] ss:$12 sps:$4 sm:$0xff]   ;;  %v4414_v4 = vld [vmem:[#allocation8 + $0x1b8] ss:$12 sps:$4 sm:$0xff]  }
 0x710   :  { %3219 = vmatpush1.bf16.msra.mxu1 %v4336_v53  ;;  %v2173_v32 = vpop.xlane.xlu1 %2172  ;;  %v2495_v6 = vmul.f32 %v4450_v31, %v5057_v5  ;;  %v4379_v53 = vld [vmem:[#allocation8 + $0xf0] ss:$12 sps:$4 sm:$0xff]   ;;  %v4385_v31 = vld [vmem:[#allocation8 + $0x120] ss:$12 sps:$4 sm:$0xff]  }
 0x711   :  { %4463 = vrcp.f32 %v2173_v32  ;;  %3220 = vmatprep.subr.bf16.mxu1 %v4341_v1  ;;  %v4387_v1 = vld [vmem:[#allocation8 + $0x124] ss:$12 sps:$4 sm:$0xff]   ;;  %v4390_v32 = vld [vmem:[#allocation8 + $0x13c] ss:$12 sps:$4 sm:$0xff]  }
 0x712   :  { %v4452_v35 = vpop.eup %4451  ;;  %v2498_v19 = vpack.c.bf16 %v2495_v6, %v2494_v45  ;;  %v4393_v45 = vld [vmem:[#allocation8 + $0x154] ss:$12 sps:$4 sm:$0xff]  }
 0x713   :  { %v4454_v18 = vpop.eup %4453  ;;  %3934 = vmatmul.mubr.msk.bf16.vlgmr.msra.gmra.mrb[44].mxu0 %vm2133_vm1, %v4452_v35  ;;  %v2617_v11 = vunpack.c.h.bf16 %v4452_v35  ;;  %v2616_v28 = vunpack.c.l.bf16 %v4452_v35  ;;  %v4422_v6 = vld [vmem:[#allocation8 + $0x1e8] ss:$12 sps:$4 sm:$0xff]   ;;  %v4391_v35 = vld [vmem:[#allocation8 + $0x150] ss:$12 sps:$4 sm:$0xff]  }
 0x714   :  { %v4456_v12 = vpop.eup %4455  ;;  %3221 = vmatpush1.bf16.msra.mxu1 %v4339_v8  ;;  %3808 = vmatpush3.bf16.msra.mxu0 %v4343_v39  ;;  %v2266_v21 = vmul.f32 %v4454_v18, %v5009_v26  ;;  %v4349_v26 = vld [vmem:[#allocation8 + $0x60] ss:$12 sps:$4 sm:$0xff]   ;;  %v4418_v8 = vld [vmem:[#allocation8 + $0x1d0] ss:$12 sps:$4 sm:$0xff]   ;;  %v4388_v39 = vld [vmem:[#allocation8 + $0x138] ss:$12 sps:$4 sm:$0xff]  }
 0x715   :  { %v2267_v5 = vmul.f32 %v4456_v12, %v5011_v23  ;;  %v4458_v48 = vpop.eup %4457  ;;  %3248 = vmatprep.mubr.bf16.mxu1 %v2498_v19  ;;  %3354 = vmatprep.mubr.bf16.mxu0 %v2498_v19  ;;  %v2627_v49 = vsel %vm2133_vm1, %v2617_v11, 0.0  ;;  %v2624_v51 = vsel %vm2133_vm1, %v2616_v28, 0.0  ;;  %v4353_v23 = vld [vmem:[#allocation8 + $0x38] ss:$12 sps:$4 sm:$0xff]   ;;  %v4394_v19 = vld [vmem:[#allocation8 + $0x168] ss:$12 sps:$4 sm:$0xff]  }
 0x716   :  { %2628 = vadd.xlane.f32.xlu1 %v2627_v49  ;;  %2625 = vadd.xlane.f32.xlu0 %v2624_v51  ;;  %v2496_v54 = vmul.f32 %v4458_v48, %v5059_v40  ;;  %v4361_v40 = vld [vmem:[#allocation8 + $0x94] ss:$12 sps:$4 sm:$0xff]   ;;  %v4396_v18 = vld [vmem:[#allocation8 + $0x16c] ss:$12 sps:$4 sm:$0xff]   ;;  %v4399_v12 = vld [vmem:[#allocation8 + $0x184] ss:$12 sps:$4 sm:$0xff]  }
 0x717   :  { %v5093_v42 = vpack.c.bf16 %v2267_v5, %v2266_v21  ;;  %v4460_v52 = vpop.eup %4459  ;;  %3222 = vmatprep.subr.bf16.mxu1 %v4346_v9  ;;  %3809 = vmatprep.subr.bf16.mxu0 %v4347_v44  ;;  %v4397_v11 = vld [vmem:[#allocation8 + $0x180] ss:$12 sps:$4 sm:$0xff]   ;;  %v4402_v28 = vld [vmem:[#allocation8 + $0x19c] ss:$12 sps:$4 sm:$0xff]   ;;  %v4400_v9 = vld [vmem:[#allocation8 + $0x198] ss:$12 sps:$4 sm:$0xff]  }
 0x718   :  { %3223 = vmatpush1.bf16.msra.mxu1 %v4344_v34  ;;  %3810 = vmatpush3.bf16.msra.mxu0 %v4348_v17  ;;  %v2497_v58 = vmul.f32 %v4460_v52, %v5062_v33  ;;  %v4362_v33 = vld [vmem:[#allocation8 + $0x128] ss:$12 sps:$4 sm:$0xff]   ;;  %v4403_v34 = vld [vmem:[#allocation8 + $0x1b0] ss:$12 sps:$4 sm:$0xff]   ;;  %v4409_v17 = vld [vmem:[#allocation8 + $0x1cc] ss:$12 sps:$4 sm:$0xff]  }
 0x719   :  { %v4462_v59 = vpop.eup %4461  ;;  %3224 = vmatprep.subr.bf16.mxu1 %v4351_v56  ;;  %3811 = vmatprep.subr.bf16.mxu0 %v4352_v57  ;;  %v4405_v44 = vld [vmem:[#allocation8 + $0x1b4] ss:$12 sps:$4 sm:$0xff]   ;;  %v4413_v5 = vld [vmem:[#allocation8 + $0x1e4] ss:$12 sps:$4 sm:$0xff]   ;;  %v4417_v49 = vld [vmem:[#allocation8 + $0x1fc] ss:$12 sps:$4 sm:$0xff]  }
 0x71a   :  { %v5097_v62 = vpack.c.bf16 %v2497_v58, %v2496_v54  ;;  %v2268_v7 = vmul.f32 %v4462_v59, %v5013_v38  ;;  %v4368_v38 = vld [vmem:[#allocation8 + $0x80] ss:$12 sps:$4 sm:$0xff]   ;;  %v4407_v21 = vld [vmem:[#allocation8 + $0x1c8] ss:$12 sps:$4 sm:$0xff]   ;;  %v4415_v51 = vld [vmem:[#allocation8 + $0x1f8] ss:$12 sps:$4 sm:$0xff]  }
 0x71b   :  { %v4464_v10 = vpop.eup %4463  ;;  %v4411_v48 = vld [vmem:[#allocation8 + $0x1e0] ss:$12 sps:$4 sm:$0xff]   ;;  %v4419_v57 = vld [vmem:[#allocation8 + $0x210] ss:$12 sps:$4 sm:$0xff]  }
 0x71c   :  { %3225 = vmatpush1.bf16.msra.mxu1 %v4349_v26  ;;  %3812 = vmatpush3.bf16.msra.mxu0 %v4353_v23  ;;  %v2269_v24 = vmul.f32 %v4464_v10, %v5016_v29  ;;  %v4371_v29 = vld [vmem:[#allocation8 + $0xc4] ss:$12 sps:$4 sm:$0xff]   ;;  %v4421_v56 = vld [vmem:[#allocation8 + $0x214] ss:$12 sps:$4 sm:$0xff]  }
 0x71d   :  { %3226 = vmatprep.subr.bf16.mxu1 %v4356_v60  ;;  %3813 = vmatprep.subr.bf16.mxu0 %v4357_v61  ;;  %v4426_v52 = vld [vmem:[#allocation8 + $0x200] ss:$12 sps:$4 sm:$0xff]   ;;  %v4423_v26 = vld [vmem:[#allocation8 + $0x228] ss:$12 sps:$4 sm:$0xff]   ;;  %v4427_v23 = vld [vmem:[#allocation8 + $0x218] ss:$12 sps:$4 sm:$0xff]  }
 0x71e   :  { %v5101_v20 = vpack.c.bf16 %v2269_v24, %v2268_v7  ;;  %v4428_v54 = vld [vmem:[#allocation8 + $0x230] ss:$12 sps:$4 sm:$0xff]  }
 0x720   :  { %3227 = vmatpush1.bf16.msra.mxu1 %v4354_v63  ;;  %3814 = vmatpush3.bf16.msra.mxu0 %v4358_v3 }
 0x721   :  { %3228 = vmatprep.subr.bf16.mxu1 %v4361_v40  ;;  %3815 = vmatprep.subr.bf16.mxu0 %v4362_v33 }
 0x724   :  { %3229 = vmatpush1.bf16.msra.mxu1 %v4359_v22  ;;  %3816 = vmatpush3.bf16.msra.mxu0 %v4363_v0 }
 0x725   :  { %3230 = vmatprep.subr.bf16.mxu1 %v4366_v15  ;;  %3817 = vmatprep.subr.bf16.mxu0 %v4367_v41 }
 0x728   :  { %3231 = vmatpush1.bf16.msra.mxu1 %v4364_v16  ;;  %3818 = vmatpush3.bf16.msra.mxu0 %v4368_v38 }
 0x729   :  { %3232 = vmatprep.subr.bf16.mxu1 %v4371_v29  ;;  %3819 = vmatprep.subr.bf16.mxu0 %v4372_v27 }
 0x72c   :  { %3233 = vmatpush1.bf16.msra.mxu1 %v4369_v14  ;;  %3820 = vmatpush3.bf16.msra.mxu0 %v4373_v36 }
 0x72d   :  { %3234 = vmatprep.subr.bf16.mxu1 %v4376_v2  ;;  %3821 = vmatprep.subr.bf16.mxu0 %v4377_v37 }
 0x730   :  { %3235 = vmatpush1.bf16.msra.mxu1 %v4374_v43  ;;  %3822 = vmatpush3.bf16.msra.mxu0 %v4378_v47 }
 0x731   :  { %3236 = vmatprep.subr.bf16.mxu1 %v4381_v30  ;;  %3937 = vmatprep.subr.bf16.mxu0 %v4406_v13 }
 0x733   :  { %3355 = vmatmul.mubr.bf16.vlgmr.msra.gmra.mrb[48].mxu0 %v5093_v42 }
 0x734   :  { %3237 = vmatpush1.bf16.msra.mxu1 %v4379_v53  ;;  %3362 = vmatprep.mubr.bf16.mxu0 %v5097_v62 }
 0x735   :  { %3238 = vmatprep.subr.bf16.mxu1 %v4384_v55  ;;  %3938 = vmatpush3.bf16.msra.mxu0 %v4406_v13 }
 0x736   :  { %3939 = vmatprep.subr.bf16.mxu0 %v4410_v25 }
 0x738   :  { %3239 = vmatpush1.bf16.msra.mxu1 %v4382_v50 }
 0x739   :  { %3240 = vmatprep.subr.bf16.mxu1 %v4387_v1  ;;  %3940 = vmatpush3.bf16.msra.mxu0 %v4410_v25 }
 0x73a   :  { %3941 = vmatprep.subr.bf16.mxu0 %v4414_v4 }
 0x73b   :  { %3363 = vmatmul.mubr.bf16.gmra.mrb[52].mxu0 %v5101_v20 }
 0x73c   :  { %3241 = vmatpush1.bf16.msra.mxu1 %v4385_v31 }
 0x73d   :  { %3242 = vmatprep.subr.bf16.mxu1 %v4390_v32  ;;  %3942 = vmatpush3.bf16.msra.mxu0 %v4414_v4  ;;  %v4473_v4 = vld [vmem:[#allocation3] sm:$0xff] }
 0x73e   :  { %3943 = vmatprep.subr.bf16.mxu0 %v4418_v8 }
 0x740   :  { %3243 = vmatpush1.bf16.msra.mxu1 %v4388_v39 }
 0x741   :  { %3244 = vmatprep.subr.bf16.mxu1 %v4393_v45  ;;  %3944 = vmatpush3.bf16.msra.mxu0 %v4418_v8  ;;  %v4474_v8 = vld [vmem:[#allocation3 + $0x8] sm:$0xff] }
 0x742   :  { %3945 = vmatprep.subr.bf16.mxu0 %v4422_v6 }
 0x744   :  { %3245 = vmatpush1.bf16.msra.mxu1 %v4391_v35 }
 0x745   :  { %3246 = vmatprep.subr.bf16.mxu1 %v4396_v18  ;;  %3946 = vmatpush3.bf16.msra.mxu0 %v4422_v6  ;;  %v4475_v6 = vld [vmem:[#allocation3 + $0x18] sm:$0xff] }
 0x746   :  { %3947 = vmatprep.subr.bf16.mxu0 %v4426_v52 }
 0x748   :  { %3247 = vmatpush1.bf16.msra.mxu1 %v4394_v19  ;;  %v4476_v19 = vld [vmem:[#allocation3 + $0x20] sm:$0xff] }
 0x749   :  { %3269 = vmatprep.subr.bf16.mxu1 %v4399_v12  ;;  %3948 = vmatpush3.bf16.msra.mxu0 %v4426_v52 }
 0x74a   :  { %3949 = vmatprep.subr.bf16.mxu0 %v4427_v23 }
 0x74b   :  { %3249 = vmatmul.mubr.bf16.vlgmr.msra.gmra.mrb[44].mxu1 %v5093_v42  ;;  %v4425_v42 = vld [vmem:[#allocation8 + $0x22c] ss:$12 sps:$4 sm:$0xff]  }
 0x74c   :  { %3258 = vmatprep.mubr.bf16.mxu1 %v5097_v62  ;;  %3270 = vmatpush1.bf16.msra.mxu1 %v4397_v11  ;;  %v4477_v11 = vld [vmem:[#allocation3 + $0x40] sm:$0xff] }
 0x74d   :  { %3271 = vmatprep.subr.bf16.mxu1 %v4402_v28  ;;  %3950 = vmatpush3.bf16.msra.mxu0 %v4427_v23 }
 0x74e   :  { %3951 = vmatprep.subr.bf16.mxu0 %v4428_v54 }
 0x750   :  { %3272 = vmatpush1.bf16.msra.mxu1 %v4400_v9 }
 0x751   :  { %3273 = vmatprep.subr.bf16.mxu1 %v4405_v44  ;;  %3952 = vmatpush3.bf16.msra.mxu0 %v4428_v54 }
 0x753   :  { %3259 = vmatmul.mubr.bf16.gmra.mrb[48].mxu1 %v5101_v20 }
 0x754   :  { %3274 = vmatpush1.bf16.msra.mxu1 %v4403_v34  ;;  %3301 = vmatprep.mubr.bf16.mxu1 %v4615_v46  ;;  %v4478_v34 = vld [vmem:[#allocation3 + $0x10] sm:$0xff] }
 0x755   :  { %3275 = vmatprep.subr.bf16.mxu1 %v4409_v17 }
 0x758   :  { %3276 = vmatpush1.bf16.msra.mxu1 %v4407_v21  ;;  %v4479_v21 = vld [vmem:[#allocation3 + $0x30] sm:$0xff] }
 0x759   :  { %3277 = vmatprep.subr.bf16.mxu1 %v4413_v5 }
 0x75c   :  { %3278 = vmatpush1.bf16.msra.mxu1 %v4411_v48 }
 0x75d   :  { %3279 = vmatprep.subr.bf16.mxu1 %v4417_v49 }
 0x760   :  { %3280 = vmatpush1.bf16.msra.mxu1 %v4415_v51 }
 0x761   :  { %3281 = vmatprep.subr.bf16.mxu1 %v4421_v56  ;;  %v4480_v56 = vld [vmem:[#allocation3 + $0x58] sm:$0xff] }
 0x764   :  { %3282 = vmatpush1.bf16.msra.mxu1 %v4419_v57 }
 0x765   :  { %3283 = vmatprep.subr.bf16.mxu1 %v4425_v42  ;;  %v4481_v42 = vld [vmem:[#allocation3 + $0x38] sm:$0xff] }
 0x768   :  { %3284 = vmatpush1.bf16.msra.mxu1 %v4423_v26 }
 0x79b   :  { %v2620_v58 = vpop.xlane.xlu0 %2619  ;;  %v2623_v59 = vpop.xlane.xlu1 %2622 }
 0x79c   :  { %4465 = vrcp.f32 %v2620_v58  ;;  %v4482_v58 = vld [vmem:[#allocation3 + $0x28] sm:$0xff] }
 0x79d   :  { %4467 = vrcp.f32 %v2623_v59 }
 0x7a3   :  { %v2626_v60 = vpop.xlane.xlu0 %2625  ;;  %v2629_v61 = vpop.xlane.xlu1 %2628 }
 0x7a4   :  { %4469 = vrcp.f32 %v2626_v60  ;;  %v4483_v60 = vld [vmem:[#allocation3 + $0x48] sm:$0xff] }
 0x7a5   :  { %4471 = vrcp.f32 %v2629_v61 }
 0x7a6   :  { %v4466_v10 = vpop.eup %4465 }
 0x7a7   :  { %v4468_v3 = vpop.eup %4467 }
 0x7ae   :  { %v4470_v0 = vpop.eup %4469 }
 0x7af   :  { %v4472_v41 = vpop.eup %4471 }
 0x7de   :  { %v2667_v62 = vpop.f32.mrb[40].mxu1 }
 0x7df   :  { %v3929_v63 = vpop.f32.mrb[41].mxu1  ;;  %v2722_v24 = vmul.f32 %v4466_v10, %v2667_v62 }
 0x7e0   :  { %v2670_v7 = vpop.f32.mrb[42].mxu1 }
 0x7e1   :  { %v2723_v40 = vmul.f32 %v4468_v3, %v2670_v7  ;;  %v3930_v33 = vpop.f32.mrb[43].mxu1  ;;  %v4484_v3 = vld [vmem:[#allocation3 + $0x50] sm:$0xff] }
 0x7e3   :  { %v2726_v20 = vpack.c.bf16 %v2723_v40, %v2722_v24 }
 0x7e5   :  { %3302 = vmatmul.mubr.bf16.vlgmr.msra.gmra.mrb[44].mxu1 %v2726_v20  ;;  %3953 = vmatprep.mubr.bf16.mxu0 %v2726_v20 }
 0x7e6   :  { %v2711_v22 = vpop.f32.mrb[44].mxu0  ;;  %3311 = vmatprep.mubr.bf16.mxu1 %v4615_v46 }
 0x7e7   :  { %v3935_v15 = vpop.f32.mrb[45].mxu0  ;;  %v2724_v38 = vmul.f32 %v4470_v0, %v2711_v22 }
 0x7e8   :  { %v2714_v16 = vpop.f32.mrb[46].mxu0 }
 0x7e9   :  { %v2725_v29 = vmul.f32 %v4472_v41, %v2714_v16  ;;  %v3936_v27 = vpop.f32.mrb[47].mxu0 }
 0x7eb   :  { %v2727_v14 = vpack.c.bf16 %v2725_v29, %v2724_v38 }
 0x7ed   :  { %3312 = vmatmul.mubr.bf16.gmra.mrb[48].mxu1 %v2727_v14  ;;  %3954 = vmatmul.mubr.bf16.vlgmr.msra.gmra.mrb[56].mxu0 %v2727_v14 }
 0x806   :  { %v3823_v36 = vpop.f32.mrb[48].mxu0 }
 0x807   :  { %v3824_v2 = vpop.f32.mrb[49].mxu0 }
 0x808   :  { %v3825_v37 = vadd.f32 %v3824_v2, %v3823_v36  ;;  %v3826_v43 = vpop.f32.mrb[50].mxu0 }
 0x809   :  { %v3827_v47 = vpop.f32.mrb[51].mxu0 }
 0x80a   :  { %v3828_v30 = vadd.f32 %v3827_v47, %v3826_v43  ;;  %v3357_v17 = vadd.f32 %v4478_v34, %v3825_v37 }
 0x80c   :  { %v3360_v59 = vadd.f32 %v4482_v58, %v3828_v30 }
 0x80e   :  { %v3829_v13 = vpop.f32.mrb[52].mxu0 }
 0x80f   :  { %v3830_v53 = vpop.f32.mrb[53].mxu0 }
 0x810   :  { %v3831_v55 = vadd.f32 %v3830_v53, %v3829_v13  ;;  %v3832_v46 = vpop.f32.mrb[54].mxu0 }
 0x811   :  { %v3833_v25 = vpop.f32.mrb[55].mxu0 }
 0x812   :  { %v3834_v50 = vadd.f32 %v3833_v25, %v3832_v46  ;;  %v3365_v28 = vadd.f32 %v4477_v11, %v3831_v55 }
 0x814   :  { %v3368_v57 = vadd.f32 %v4480_v56, %v3834_v50 }
 0x8b8   :  { %v3303_v1 = vpop.f32.mrb[44].mxu1 }
 0x8b9   :  { %v3957_v31 = vadd.f32 %v4473_v4, %v3303_v1  ;;  %v3305_v32 = vpop.f32.mrb[45].mxu1 }
 0x8ba   :  { %v3958_v39 = vadd.f32 %v4474_v8, %v3305_v32  ;;  %v3307_v45 = vpop.f32.mrb[46].mxu1 }
 0x8bb   :  { %3420 = vst [vmem:[#allocation11] sm:$0xff] %v3957_v31  ;;  %v3959_v35 = vadd.f32 %v4475_v6, %v3307_v45  ;;  %v3309_v18 = vpop.f32.mrb[47].mxu1 }
 0x8bc   :  { %3421 = vst [vmem:[#allocation11 + $0x8] sm:$0xff] %v3958_v39  ;;  %v3960_v12 = vadd.f32 %v4476_v19, %v3309_v18 }
 0x8bd   :  { %3423 = vst [vmem:[#allocation11 + $0x18] sm:$0xff] %v3959_v35 }
 0x8be   :  { %3424 = vst [vmem:[#allocation11 + $0x20] sm:$0xff] %v3960_v12 }
 0x8c0   :  { %v3313_v9 = vpop.f32.mrb[48].mxu1  ;;  %v3955_v44 = vpop.f32.mrb[56].mxu0 }
 0x8c1   :  { %v3961_v5 = vadd.f32 %v4479_v21, %v3313_v9  ;;  %v3414_v48 = vadd.f32 %v3955_v44, %v3365_v28  ;;  %v3315_v49 = vpop.f32.mrb[49].mxu1  ;;  %v3405_v51 = vpop.f32.mrb[57].mxu0 }
 0x8c2   :  { %v3962_v52 = vadd.f32 %v4481_v42, %v3315_v49  ;;  %v3406_v26 = vadd.f32 %v3405_v51, %v3357_v17  ;;  %v3317_v23 = vpop.f32.mrb[50].mxu1  ;;  %v3956_v54 = vpop.f32.mrb[58].mxu0 }
 0x8c3   :  { %3426 = vst [vmem:[#allocation11 + $0x30] sm:$0xff] %v3961_v5  ;;  %3428 = vst [vmem:[#allocation11 + $0x40] sm:$0xff] %v3414_v48  ;;  %v3963_v61 = vadd.f32 %v4483_v60, %v3317_v23  ;;  %v3417_v62 = vadd.f32 %v3956_v54, %v3368_v57  ;;  %v3319_v10 = vpop.f32.mrb[51].mxu1  ;;  %v3408_v63 = vpop.f32.mrb[59].mxu0 }
 0x8c4   :  { %3427 = vst [vmem:[#allocation11 + $0x38] sm:$0xff] %v3962_v52  ;;  %3422 = vst [vmem:[#allocation11 + $0x10] sm:$0xff] %v3406_v26  ;;  %v3964_v7 = vadd.f32 %v4484_v3, %v3319_v10  ;;  %v3409_v24 = vadd.f32 %v3408_v63, %v3360_v59 }
 0x8c5   :  { %3429 = vst [vmem:[#allocation11 + $0x48] sm:$0xff] %v3963_v61  ;;  %3431 = vst [vmem:[#allocation11 + $0x58] sm:$0xff] %v3417_v62 }
 0x8c6   :  { %3430 = vst [vmem:[#allocation11 + $0x50] sm:$0xff] %v3964_v7  ;;  %3425 = vst [vmem:[#allocation11 + $0x28] sm:$0xff] %v3409_v24 }
 0x8c7   :  { %4584 = shalt.err (!%p4581_p8)
}
 0x8c8   :  { %s4585_s21 = scalar_lea.hbm %s5130_s4, 1536 }
 0x8c9   :  { %p4586_p9 = scmp.ne.s32.totalorder %s5130_s4, %s4585_s21  ;;  %p4589_p10 = scmp.lt.u32.totalorder %s4585_s21, %s5130_s4 }
 0x8cb   :  { %p4591_p11 = pnand %p4589_p10, %p4586_p9 }
 0x8cd   :  { %4594 = shalt.err (!%p4591_p11)
}
 0x8ce   :  { %3443 = dma.vmem_to_hbm [thread:$0]  %s3438_s17, 1536, %s5130_s4, [#allocation5], %s4607_s1, %s4607_s1, %s4608_s13  }
 0x8cf   :  { %4601 = dma.done.wait [#allocation5], 1536  }
 0x8d0   :  { %4602 = vsyncadd [#allocation5], 4294965760 }
 0x8d1   :  { %3447 = vsyncpa [#allocation4], 1 }
 0x8d2   :  { %3448 = vsyncpa [#allocation7], 1 }
 0x8d3   :  { %3449 = vsyncpa [#allocation10], 1 }
 0x8d4   :  { %3450 = vsyncpa [#allocation5], 1 }

</bundles_post_ra>
